<compile_context>
chip_gen: v6e
topology: v6e:2x2x1
jax: 0.10.0
libtpu: 0.0.40
codegen_flags: <defaults>
</compile_context>

<pallas_src>
import jax
import jax.numpy as jnp
from jax import lax
from jax.experimental import pallas as pl
from jax.experimental.pallas import tpu as pltpu

HIDDEN = 128   # hidden_size from the module
VOCAB = 50     # in_size (small synthetic vocab)
SEQ = 8        # sequence length


def gru_encoder_kernel(tok_ref, gi_table_ref, whh_t_ref, b_hn_ref, h0_ref, y_ref):
    """Fused gi-gather + full GRU recurrence for one sequence (one grid step).

    tok_ref      : SMEM [B, T] int32   token ids (scalar-prefetched)
    gi_table_ref : VMEM [VOCAB, 3H]    emb @ W_ih^T + (b_ih + [b_hr, b_hz, 0])
    whh_t_ref    : VMEM [H, 3H]        W_hh^T (gate order r, z, n)
    b_hn_ref     : VMEM [1, H]         b_hn (kept inside the r*(...) term)
    h0_ref       : VMEM [1, H]         initial hidden state
    y_ref        : VMEM [T, H]         per-step hidden outputs for this sequence
    """
    H = HIDDEN
    b = pl.program_id(0)

    whh_t = whh_t_ref[...]          # (H, 3H), resident across the grid
    b_hn = b_hn_ref[...]            # (1, H)
    h = h0_ref[...]                 # (1, H)

    # ---- Gather pre-projected input gates for this sequence ------------------
    # Embedding lookup + input matmul + bias folds collapsed into one row gather.
    gi_rows = [gi_table_ref[pl.ds(tok_ref[b, t], 1), :] for t in range(SEQ)]

    # ---- Unrolled recurrence: only the h-dependent matmul + gate math --------
    # TODO(synk): keep W_hh^T stationary on the MXU across the 8 steps with
    # pltpu.matmul_push_rhs / matmul_acc_lhs / matmul_pop (per-gate staging on
    # v5e's 4x128^2 vs v6e/v7x's 2x256^2 MXUs) once that path is validated.
    ys = []
    for t in range(SEQ):
        gi_t = gi_rows[t]                                              # (1, 3H)
        gh = jnp.dot(h, whh_t, preferred_element_type=jnp.float32)     # (1, 3H)
        # sigmoid(x) == 0.5 * (tanh(x/2) + 1): one EUP push on the serial path.
        r = 0.5 * jnp.tanh(0.5 * (gi_t[:, 0:H] + gh[:, 0:H])) + 0.5
        z = 0.5 * jnp.tanh(0.5 * (gi_t[:, H:2 * H] + gh[:, H:2 * H])) + 0.5
        n = jnp.tanh(gi_t[:, 2 * H:3 * H] + r * (gh[:, 2 * H:3 * H] + b_hn))
        h = n + z * (h - n)          # == (1 - z) * n + z * h, one fewer multiply
        ys.append(h)

    # ---- Single full-tile (8, 128) unmasked store -----------------------------
    y_ref[...] = jnp.concatenate(ys, axis=0)


def prepare_params(raw_params):
    """One-time weight prep: fold W_ih + biases into the embedding table."""
    emb_table, w_ih, w_hh, b_ih, b_hh, h0 = raw_params
    H = HIDDEN
    # b_ih (all gates) + b_hr, b_hz folded; b_hn must stay inside r * (.).
    gi_bias = b_ih + jnp.concatenate([b_hh[:2 * H], jnp.zeros((H,), jnp.float32)])
    gi_table = (emb_table @ w_ih.T + gi_bias[None, :]).astype(jnp.float32)  # (V, 3H)
    whh_t = jnp.asarray(w_hh.T, jnp.float32)                                 # (H, 3H)
    b_hn = b_hh[2 * H:3 * H].reshape(1, H).astype(jnp.float32)
    h0 = jnp.asarray(h0, jnp.float32).reshape(1, H)
    # TODO(synk): optionally cast whh_t to bf16 (halves MXU weight-push cycles);
    # requires relaxing the 1e-4 correctness tolerance.
    return gi_table, whh_t, b_hn, h0


def encoder_forward_batched(tok_batch, prepped):
    """tok_batch: int32 [B, T] independent sequences.  Returns y [B, T, H]."""
    gi_table, whh_t, b_hn, h0 = prepped
    B, T = tok_batch.shape
    H = HIDDEN
    assert T == SEQ
    # Clamp: VMEM row gathers have no runtime bounds check.
    tok_batch = jnp.clip(tok_batch, 0, VOCAB - 1).astype(jnp.int32)

    grid_spec = pltpu.PrefetchScalarGridSpec(
        num_scalar_prefetch=1,          # token ids -> SMEM before the grid runs
        grid=(B,),
        in_specs=[
            pl.BlockSpec((VOCAB, 3 * H), lambda b, tok: (0, 0)),   # resident
            pl.BlockSpec((H, 3 * H), lambda b, tok: (0, 0)),       # resident
            pl.BlockSpec((1, H), lambda b, tok: (0, 0)),           # resident
            pl.BlockSpec((1, H), lambda b, tok: (0, 0)),           # resident
        ],
        out_specs=pl.BlockSpec((None, T, H), lambda b, tok: (b, 0, 0)),
    )
    y = pl.pallas_call(
        gru_encoder_kernel,
        out_shape=jax.ShapeDtypeStruct((B, T, H), jnp.float32),
        grid_spec=grid_spec,
        compiler_params=pltpu.CompilerParams(
            dimension_semantics=("parallel",)),   # v7x: split sequences across TCs
    )(tok_batch, gi_table, whh_t, b_hn, h0)
    return y


def encoder_forward(x_tokens, prepped):
    """x_tokens: int32 [T].  Returns (y [T,1,H], hidden [1,1,H]) like the module."""
    y = encoder_forward_batched(x_tokens.reshape(1, SEQ), prepped)[0]   # (T, H)
    # hn == last row of y (no separate kernel output needed).
    return y.reshape(SEQ, 1, HIDDEN), y[SEQ - 1].reshape(1, 1, HIDDEN)


def gru_reference(emb, w_ih, w_hh, b_ih, b_hh, h0):
    """Pure-JAX reference of torch.nn.GRU(seq, batch=1)."""
    H = HIDDEN

    def step(h, x_t):
        gi = x_t @ w_ih.T + b_ih
        gh = h @ w_hh.T + b_hh
        r = jax.nn.sigmoid(gi[0:H] + gh[0:H])
        z = jax.nn.sigmoid(gi[H:2 * H] + gh[H:2 * H])
        n = jnp.tanh(gi[2 * H:3 * H] + r * gh[2 * H:3 * H])
        h_new = (1.0 - z) * n + z * h
        return h_new, h_new

    h_final, ys = lax.scan(step, h0.reshape(H), emb)
    return ys, h_final


def make_params(key):
    kE, k1, k2, k3, k4 = jax.random.split(key, 5)
    H = HIDDEN
    scale = 1.0 / jnp.sqrt(H)
    emb_table = jax.random.normal(kE, (VOCAB, H), jnp.float32)
    w_ih = jax.random.uniform(k1, (3 * H, H), jnp.float32, -scale, scale)
    w_hh = jax.random.uniform(k2, (3 * H, H), jnp.float32, -scale, scale)
    b_ih = jax.random.uniform(k3, (3 * H,), jnp.float32, -scale, scale)
    b_hh = jax.random.uniform(k4, (3 * H,), jnp.float32, -scale, scale)
    h0 = jnp.zeros((1, H), jnp.float32)   # self.hidden_cell = zeros(1,1,H)
    return emb_table, w_ih, w_hh, b_ih, b_hh, h0


if __name__ == "__main__":
    key = jax.random.PRNGKey(0)
    kp, kx, kb = jax.random.split(key, 3)
    raw_params = make_params(kp)
    prepped = prepare_params(raw_params)
    emb_table, w_ih, w_hh, b_ih, b_hh, h0 = raw_params

    # ---- Single-sequence forward (matches the PyTorch module, batch = 1) -------
    x_tokens = jax.random.randint(kx, (SEQ,), 0, VOCAB, dtype=jnp.int32)
    y, hidden = jax.jit(encoder_forward)(x_tokens, prepped)
    jax.block_until_ready((y, hidden))

    emb = jnp.take(emb_table, x_tokens, axis=0).astype(jnp.float32)
    y_ref, h_ref = gru_reference(emb, w_ih, w_hh, b_ih, b_hh, h0)
    assert y.shape == (SEQ, 1, HIDDEN)
    assert hidden.shape == (1, 1, HIDDEN)
    assert jnp.allclose(y.reshape(SEQ, HIDDEN), y_ref, atol=1e-4, rtol=1e-4)
    assert jnp.allclose(hidden.reshape(HIDDEN), h_ref, atol=1e-4, rtol=1e-4)

    # ---- Batched encode: independent sequences amortize one pallas_call --------
    B = 4
    xb = jax.random.randint(kb, (B, SEQ), 0, VOCAB, dtype=jnp.int32)
    yb = jax.jit(encoder_forward_batched)(xb, prepped)
    jax.block_until_ready(yb)
    for bi in range(B):
        emb_b = jnp.take(emb_table, xb[bi], axis=0).astype(jnp.float32)
        yb_ref, _ = gru_reference(emb_b, w_ih, w_hh, b_ih, b_hh, h0)
        assert jnp.allclose(yb[bi], yb_ref, atol=1e-4, rtol=1e-4)

    print("KERNEL_OK")
</pallas_src>

<mosaic_0001>
module attributes {stable_mosaic.version = 11 : i64} {
  func.func @gru_encoder_kernel(%arg0: i32, %arg1: memref<1x8xi32, #tpu.memory_space<smem>>, %arg2: memref<50x384xf32, #tpu.memory_space<vmem>>, %arg3: memref<128x384xf32, #tpu.memory_space<vmem>>, %arg4: memref<1x128xf32, #tpu.memory_space<vmem>>, %arg5: memref<1x128xf32, #tpu.memory_space<vmem>>, %arg6: memref<1x8x128xf32, #tpu.memory_space<vmem>>) attributes {dimension_semantics = [#tpu.dimension_semantics<parallel>], iteration_bounds = array<i64: 1>, scalar_prefetch = 1 : i64, scratch_operands = 0 : i64, tpu.core_type = #tpu.core_type<tc>, window_params = [{pipeline_mode = #tpu.pipeline_mode<synchronous>, transform_indices = @transform_0, window_bounds = array<i64: 50, 384>}, {pipeline_mode = #tpu.pipeline_mode<synchronous>, transform_indices = @transform_1, window_bounds = array<i64: 128, 384>}, {pipeline_mode = #tpu.pipeline_mode<synchronous>, transform_indices = @transform_2, window_bounds = array<i64: 1, 128>}, {pipeline_mode = #tpu.pipeline_mode<synchronous>, transform_indices = @transform_3, window_bounds = array<i64: 1, 128>}, {transform_indices = @transform_4, window_bounds = array<i64: 1, 8, 128>}]} {
    %c0 = arith.constant 0 : index
    %c0_0 = arith.constant 0 : index
    %0 = vector.load %arg3[%c0, %c0_0] : memref<128x384xf32, #tpu.memory_space<vmem>>, vector<128x384xf32>
    %c0_1 = arith.constant 0 : index
    %c0_2 = arith.constant 0 : index
    %1 = vector.load %arg4[%c0_1, %c0_2] : memref<1x128xf32, #tpu.memory_space<vmem>>, vector<1x128xf32>
    %c0_3 = arith.constant 0 : index
    %c0_4 = arith.constant 0 : index
    %2 = vector.load %arg5[%c0_3, %c0_4] : memref<1x128xf32, #tpu.memory_space<vmem>>, vector<1x128xf32>
    %3 = arith.index_cast %arg0 : i32 to index
    %c0_5 = arith.constant 0 : index
    %4 = memref.load %arg1[%3, %c0_5] : memref<1x8xi32, #tpu.memory_space<smem>>
    %5 = arith.index_cast %4 : i32 to index
    %c0_6 = arith.constant 0 : index
    %6 = vector.load %arg2[%5, %c0_6] : memref<50x384xf32, #tpu.memory_space<vmem>>, vector<1x384xf32>
    %7 = arith.index_cast %arg0 : i32 to index
    %c1 = arith.constant 1 : index
    %8 = memref.load %arg1[%7, %c1] : memref<1x8xi32, #tpu.memory_space<smem>>
    %9 = arith.index_cast %8 : i32 to index
    %c0_7 = arith.constant 0 : index
    %10 = vector.load %arg2[%9, %c0_7] : memref<50x384xf32, #tpu.memory_space<vmem>>, vector<1x384xf32>
    %11 = arith.index_cast %arg0 : i32 to index
    %c2 = arith.constant 2 : index
    %12 = memref.load %arg1[%11, %c2] : memref<1x8xi32, #tpu.memory_space<smem>>
    %13 = arith.index_cast %12 : i32 to index
    %c0_8 = arith.constant 0 : index
    %14 = vector.load %arg2[%13, %c0_8] : memref<50x384xf32, #tpu.memory_space<vmem>>, vector<1x384xf32>
    %15 = arith.index_cast %arg0 : i32 to index
    %c3 = arith.constant 3 : index
    %16 = memref.load %arg1[%15, %c3] : memref<1x8xi32, #tpu.memory_space<smem>>
    %17 = arith.index_cast %16 : i32 to index
    %c0_9 = arith.constant 0 : index
    %18 = vector.load %arg2[%17, %c0_9] : memref<50x384xf32, #tpu.memory_space<vmem>>, vector<1x384xf32>
    %19 = arith.index_cast %arg0 : i32 to index
    %c4 = arith.constant 4 : index
    %20 = memref.load %arg1[%19, %c4] : memref<1x8xi32, #tpu.memory_space<smem>>
    %21 = arith.index_cast %20 : i32 to index
    %c0_10 = arith.constant 0 : index
    %22 = vector.load %arg2[%21, %c0_10] : memref<50x384xf32, #tpu.memory_space<vmem>>, vector<1x384xf32>
    %23 = arith.index_cast %arg0 : i32 to index
    %c5 = arith.constant 5 : index
    %24 = memref.load %arg1[%23, %c5] : memref<1x8xi32, #tpu.memory_space<smem>>
    %25 = arith.index_cast %24 : i32 to index
    %c0_11 = arith.constant 0 : index
    %26 = vector.load %arg2[%25, %c0_11] : memref<50x384xf32, #tpu.memory_space<vmem>>, vector<1x384xf32>
    %27 = arith.index_cast %arg0 : i32 to index
    %c6 = arith.constant 6 : index
    %28 = memref.load %arg1[%27, %c6] : memref<1x8xi32, #tpu.memory_space<smem>>
    %29 = arith.index_cast %28 : i32 to index
    %c0_12 = arith.constant 0 : index
    %30 = vector.load %arg2[%29, %c0_12] : memref<50x384xf32, #tpu.memory_space<vmem>>, vector<1x384xf32>
    %31 = arith.index_cast %arg0 : i32 to index
    %c7 = arith.constant 7 : index
    %32 = memref.load %arg1[%31, %c7] : memref<1x8xi32, #tpu.memory_space<smem>>
    %33 = arith.index_cast %32 : i32 to index
    %c0_13 = arith.constant 0 : index
    %34 = vector.load %arg2[%33, %c0_13] : memref<50x384xf32, #tpu.memory_space<vmem>>, vector<1x384xf32>
    %cst = arith.constant dense<0.000000e+00> : vector<1x384xf32>
    %35 = tpu.matmul %2, %0, %cst {dimension_numbers = #tpu.dot_dimension_numbers<[1], [0], [0], [1], [0, 0, 1, 1], [], []>} : vector<1x128xf32>, vector<128x384xf32>, vector<1x384xf32> -> vector<1x384xf32>
    %36 = vector.extract_strided_slice %6 {offsets = [0, 0], sizes = [1, 128], strides = [1, 1]} : vector<1x384xf32> to vector<1x128xf32>
    %37 = vector.extract_strided_slice %35 {offsets = [0, 0], sizes = [1, 128], strides = [1, 1]} : vector<1x384xf32> to vector<1x128xf32>
    %38 = arith.addf %36, %37 : vector<1x128xf32>
    %cst_14 = arith.constant 5.000000e-01 : f32
    %39 = vector.broadcast %cst_14 : f32 to vector<1x128xf32>
    %40 = arith.mulf %39, %38 : vector<1x128xf32>
    %41 = math.tanh %40 : vector<1x128xf32>
    %cst_15 = arith.constant 5.000000e-01 : f32
    %42 = vector.broadcast %cst_15 : f32 to vector<1x128xf32>
    %43 = arith.mulf %42, %41 : vector<1x128xf32>
    %cst_16 = arith.constant 5.000000e-01 : f32
    %44 = vector.broadcast %cst_16 : f32 to vector<1x128xf32>
    %45 = arith.addf %43, %44 : vector<1x128xf32>
    %46 = vector.extract_strided_slice %6 {offsets = [0, 128], sizes = [1, 128], strides = [1, 1]} : vector<1x384xf32> to vector<1x128xf32>
    %47 = vector.extract_strided_slice %35 {offsets = [0, 128], sizes = [1, 128], strides = [1, 1]} : vector<1x384xf32> to vector<1x128xf32>
    %48 = arith.addf %46, %47 : vector<1x128xf32>
    %cst_17 = arith.constant 5.000000e-01 : f32
    %49 = vector.broadcast %cst_17 : f32 to vector<1x128xf32>
    %50 = arith.mulf %49, %48 : vector<1x128xf32>
    %51 = math.tanh %50 : vector<1x128xf32>
    %cst_18 = arith.constant 5.000000e-01 : f32
    %52 = vector.broadcast %cst_18 : f32 to vector<1x128xf32>
    %53 = arith.mulf %52, %51 : vector<1x128xf32>
    %cst_19 = arith.constant 5.000000e-01 : f32
    %54 = vector.broadcast %cst_19 : f32 to vector<1x128xf32>
    %55 = arith.addf %53, %54 : vector<1x128xf32>
    %56 = vector.extract_strided_slice %6 {offsets = [0, 256], sizes = [1, 128], strides = [1, 1]} : vector<1x384xf32> to vector<1x128xf32>
    %57 = vector.extract_strided_slice %35 {offsets = [0, 256], sizes = [1, 128], strides = [1, 1]} : vector<1x384xf32> to vector<1x128xf32>
    %58 = arith.addf %57, %1 : vector<1x128xf32>
    %59 = arith.mulf %45, %58 : vector<1x128xf32>
    %60 = arith.addf %56, %59 : vector<1x128xf32>
    %61 = math.tanh %60 : vector<1x128xf32>
    %62 = arith.subf %2, %61 : vector<1x128xf32>
    %63 = arith.mulf %55, %62 : vector<1x128xf32>
    %64 = arith.addf %61, %63 : vector<1x128xf32>
    %cst_20 = arith.constant dense<0.000000e+00> : vector<1x384xf32>
    %65 = tpu.matmul %64, %0, %cst_20 {dimension_numbers = #tpu.dot_dimension_numbers<[1], [0], [0], [1], [0, 0, 1, 1], [], []>} : vector<1x128xf32>, vector<128x384xf32>, vector<1x384xf32> -> vector<1x384xf32>
    %66 = vector.extract_strided_slice %10 {offsets = [0, 0], sizes = [1, 128], strides = [1, 1]} : vector<1x384xf32> to vector<1x128xf32>
    %67 = vector.extract_strided_slice %65 {offsets = [0, 0], sizes = [1, 128], strides = [1, 1]} : vector<1x384xf32> to vector<1x128xf32>
    %68 = arith.addf %66, %67 : vector<1x128xf32>
    %cst_21 = arith.constant 5.000000e-01 : f32
    %69 = vector.broadcast %cst_21 : f32 to vector<1x128xf32>
    %70 = arith.mulf %69, %68 : vector<1x128xf32>
    %71 = math.tanh %70 : vector<1x128xf32>
    %cst_22 = arith.constant 5.000000e-01 : f32
    %72 = vector.broadcast %cst_22 : f32 to vector<1x128xf32>
    %73 = arith.mulf %72, %71 : vector<1x128xf32>
    %cst_23 = arith.constant 5.000000e-01 : f32
    %74 = vector.broadcast %cst_23 : f32 to vector<1x128xf32>
    %75 = arith.addf %73, %74 : vector<1x128xf32>
    %76 = vector.extract_strided_slice %10 {offsets = [0, 128], sizes = [1, 128], strides = [1, 1]} : vector<1x384xf32> to vector<1x128xf32>
    %77 = vector.extract_strided_slice %65 {offsets = [0, 128], sizes = [1, 128], strides = [1, 1]} : vector<1x384xf32> to vector<1x128xf32>
    %78 = arith.addf %76, %77 : vector<1x128xf32>
    %cst_24 = arith.constant 5.000000e-01 : f32
    %79 = vector.broadcast %cst_24 : f32 to vector<1x128xf32>
    %80 = arith.mulf %79, %78 : vector<1x128xf32>
    %81 = math.tanh %80 : vector<1x128xf32>
    %cst_25 = arith.constant 5.000000e-01 : f32
    %82 = vector.broadcast %cst_25 : f32 to vector<1x128xf32>
    %83 = arith.mulf %82, %81 : vector<1x128xf32>
    %cst_26 = arith.constant 5.000000e-01 : f32
    %84 = vector.broadcast %cst_26 : f32 to vector<1x128xf32>
    %85 = arith.addf %83, %84 : vector<1x128xf32>
    %86 = vector.extract_strided_slice %10 {offsets = [0, 256], sizes = [1, 128], strides = [1, 1]} : vector<1x384xf32> to vector<1x128xf32>
    %87 = vector.extract_strided_slice %65 {offsets = [0, 256], sizes = [1, 128], strides = [1, 1]} : vector<1x384xf32> to vector<1x128xf32>
    %88 = arith.addf %87, %1 : vector<1x128xf32>
    %89 = arith.mulf %75, %88 : vector<1x128xf32>
    %90 = arith.addf %86, %89 : vector<1x128xf32>
    %91 = math.tanh %90 : vector<1x128xf32>
    %92 = arith.subf %64, %91 : vector<1x128xf32>
    %93 = arith.mulf %85, %92 : vector<1x128xf32>
    %94 = arith.addf %91, %93 : vector<1x128xf32>
    %cst_27 = arith.constant dense<0.000000e+00> : vector<1x384xf32>
    %95 = tpu.matmul %94, %0, %cst_27 {dimension_numbers = #tpu.dot_dimension_numbers<[1], [0], [0], [1], [0, 0, 1, 1], [], []>} : vector<1x128xf32>, vector<128x384xf32>, vector<1x384xf32> -> vector<1x384xf32>
    %96 = vector.extract_strided_slice %14 {offsets = [0, 0], sizes = [1, 128], strides = [1, 1]} : vector<1x384xf32> to vector<1x128xf32>
    %97 = vector.extract_strided_slice %95 {offsets = [0, 0], sizes = [1, 128], strides = [1, 1]} : vector<1x384xf32> to vector<1x128xf32>
    %98 = arith.addf %96, %97 : vector<1x128xf32>
    %cst_28 = arith.constant 5.000000e-01 : f32
    %99 = vector.broadcast %cst_28 : f32 to vector<1x128xf32>
    %100 = arith.mulf %99, %98 : vector<1x128xf32>
    %101 = math.tanh %100 : vector<1x128xf32>
    %cst_29 = arith.constant 5.000000e-01 : f32
    %102 = vector.broadcast %cst_29 : f32 to vector<1x128xf32>
    %103 = arith.mulf %102, %101 : vector<1x128xf32>
    %cst_30 = arith.constant 5.000000e-01 : f32
    %104 = vector.broadcast %cst_30 : f32 to vector<1x128xf32>
    %105 = arith.addf %103, %104 : vector<1x128xf32>
    %106 = vector.extract_strided_slice %14 {offsets = [0, 128], sizes = [1, 128], strides = [1, 1]} : vector<1x384xf32> to vector<1x128xf32>
    %107 = vector.extract_strided_slice %95 {offsets = [0, 128], sizes = [1, 128], strides = [1, 1]} : vector<1x384xf32> to vector<1x128xf32>
    %108 = arith.addf %106, %107 : vector<1x128xf32>
    %cst_31 = arith.constant 5.000000e-01 : f32
    %109 = vector.broadcast %cst_31 : f32 to vector<1x128xf32>
    %110 = arith.mulf %109, %108 : vector<1x128xf32>
    %111 = math.tanh %110 : vector<1x128xf32>
    %cst_32 = arith.constant 5.000000e-01 : f32
    %112 = vector.broadcast %cst_32 : f32 to vector<1x128xf32>
    %113 = arith.mulf %112, %111 : vector<1x128xf32>
    %cst_33 = arith.constant 5.000000e-01 : f32
    %114 = vector.broadcast %cst_33 : f32 to vector<1x128xf32>
    %115 = arith.addf %113, %114 : vector<1x128xf32>
    %116 = vector.extract_strided_slice %14 {offsets = [0, 256], sizes = [1, 128], strides = [1, 1]} : vector<1x384xf32> to vector<1x128xf32>
    %117 = vector.extract_strided_slice %95 {offsets = [0, 256], sizes = [1, 128], strides = [1, 1]} : vector<1x384xf32> to vector<1x128xf32>
    %118 = arith.addf %117, %1 : vector<1x128xf32>
    %119 = arith.mulf %105, %118 : vector<1x128xf32>
    %120 = arith.addf %116, %119 : vector<1x128xf32>
    %121 = math.tanh %120 : vector<1x128xf32>
    %122 = arith.subf %94, %121 : vector<1x128xf32>
    %123 = arith.mulf %115, %122 : vector<1x128xf32>
    %124 = arith.addf %121, %123 : vector<1x128xf32>
    %cst_34 = arith.constant dense<0.000000e+00> : vector<1x384xf32>
    %125 = tpu.matmul %124, %0, %cst_34 {dimension_numbers = #tpu.dot_dimension_numbers<[1], [0], [0], [1], [0, 0, 1, 1], [], []>} : vector<1x128xf32>, vector<128x384xf32>, vector<1x384xf32> -> vector<1x384xf32>
    %126 = vector.extract_strided_slice %18 {offsets = [0, 0], sizes = [1, 128], strides = [1, 1]} : vector<1x384xf32> to vector<1x128xf32>
    %127 = vector.extract_strided_slice %125 {offsets = [0, 0], sizes = [1, 128], strides = [1, 1]} : vector<1x384xf32> to vector<1x128xf32>
    %128 = arith.addf %126, %127 : vector<1x128xf32>
    %cst_35 = arith.constant 5.000000e-01 : f32
    %129 = vector.broadcast %cst_35 : f32 to vector<1x128xf32>
    %130 = arith.mulf %129, %128 : vector<1x128xf32>
    %131 = math.tanh %130 : vector<1x128xf32>
    %cst_36 = arith.constant 5.000000e-01 : f32
    %132 = vector.broadcast %cst_36 : f32 to vector<1x128xf32>
    %133 = arith.mulf %132, %131 : vector<1x128xf32>
    %cst_37 = arith.constant 5.000000e-01 : f32
    %134 = vector.broadcast %cst_37 : f32 to vector<1x128xf32>
    %135 = arith.addf %133, %134 : vector<1x128xf32>
    %136 = vector.extract_strided_slice %18 {offsets = [0, 128], sizes = [1, 128], strides = [1, 1]} : vector<1x384xf32> to vector<1x128xf32>
    %137 = vector.extract_strided_slice %125 {offsets = [0, 128], sizes = [1, 128], strides = [1, 1]} : vector<1x384xf32> to vector<1x128xf32>
    %138 = arith.addf %136, %137 : vector<1x128xf32>
    %cst_38 = arith.constant 5.000000e-01 : f32
    %139 = vector.broadcast %cst_38 : f32 to vector<1x128xf32>
    %140 = arith.mulf %139, %138 : vector<1x128xf32>
    %141 = math.tanh %140 : vector<1x128xf32>
    %cst_39 = arith.constant 5.000000e-01 : f32
    %142 = vector.broadcast %cst_39 : f32 to vector<1x128xf32>
    %143 = arith.mulf %142, %141 : vector<1x128xf32>
    %cst_40 = arith.constant 5.000000e-01 : f32
    %144 = vector.broadcast %cst_40 : f32 to vector<1x128xf32>
    %145 = arith.addf %143, %144 : vector<1x128xf32>
    %146 = vector.extract_strided_slice %18 {offsets = [0, 256], sizes = [1, 128], strides = [1, 1]} : vector<1x384xf32> to vector<1x128xf32>
    %147 = vector.extract_strided_slice %125 {offsets = [0, 256], sizes = [1, 128], strides = [1, 1]} : vector<1x384xf32> to vector<1x128xf32>
    %148 = arith.addf %147, %1 : vector<1x128xf32>
    %149 = arith.mulf %135, %148 : vector<1x128xf32>
    %150 = arith.addf %146, %149 : vector<1x128xf32>
    %151 = math.tanh %150 : vector<1x128xf32>
    %152 = arith.subf %124, %151 : vector<1x128xf32>
    %153 = arith.mulf %145, %152 : vector<1x128xf32>
    %154 = arith.addf %151, %153 : vector<1x128xf32>
    %cst_41 = arith.constant dense<0.000000e+00> : vector<1x384xf32>
    %155 = tpu.matmul %154, %0, %cst_41 {dimension_numbers = #tpu.dot_dimension_numbers<[1], [0], [0], [1], [0, 0, 1, 1], [], []>} : vector<1x128xf32>, vector<128x384xf32>, vector<1x384xf32> -> vector<1x384xf32>
    %156 = vector.extract_strided_slice %22 {offsets = [0, 0], sizes = [1, 128], strides = [1, 1]} : vector<1x384xf32> to vector<1x128xf32>
    %157 = vector.extract_strided_slice %155 {offsets = [0, 0], sizes = [1, 128], strides = [1, 1]} : vector<1x384xf32> to vector<1x128xf32>
    %158 = arith.addf %156, %157 : vector<1x128xf32>
    %cst_42 = arith.constant 5.000000e-01 : f32
    %159 = vector.broadcast %cst_42 : f32 to vector<1x128xf32>
    %160 = arith.mulf %159, %158 : vector<1x128xf32>
    %161 = math.tanh %160 : vector<1x128xf32>
    %cst_43 = arith.constant 5.000000e-01 : f32
    %162 = vector.broadcast %cst_43 : f32 to vector<1x128xf32>
    %163 = arith.mulf %162, %161 : vector<1x128xf32>
    %cst_44 = arith.constant 5.000000e-01 : f32
    %164 = vector.broadcast %cst_44 : f32 to vector<1x128xf32>
    %165 = arith.addf %163, %164 : vector<1x128xf32>
    %166 = vector.extract_strided_slice %22 {offsets = [0, 128], sizes = [1, 128], strides = [1, 1]} : vector<1x384xf32> to vector<1x128xf32>
    %167 = vector.extract_strided_slice %155 {offsets = [0, 128], sizes = [1, 128], strides = [1, 1]} : vector<1x384xf32> to vector<1x128xf32>
    %168 = arith.addf %166, %167 : vector<1x128xf32>
    %cst_45 = arith.constant 5.000000e-01 : f32
    %169 = vector.broadcast %cst_45 : f32 to vector<1x128xf32>
    %170 = arith.mulf %169, %168 : vector<1x128xf32>
    %171 = math.tanh %170 : vector<1x128xf32>
    %cst_46 = arith.constant 5.000000e-01 : f32
    %172 = vector.broadcast %cst_46 : f32 to vector<1x128xf32>
    %173 = arith.mulf %172, %171 : vector<1x128xf32>
    %cst_47 = arith.constant 5.000000e-01 : f32
    %174 = vector.broadcast %cst_47 : f32 to vector<1x128xf32>
    %175 = arith.addf %173, %174 : vector<1x128xf32>
    %176 = vector.extract_strided_slice %22 {offsets = [0, 256], sizes = [1, 128], strides = [1, 1]} : vector<1x384xf32> to vector<1x128xf32>
    %177 = vector.extract_strided_slice %155 {offsets = [0, 256], sizes = [1, 128], strides = [1, 1]} : vector<1x384xf32> to vector<1x128xf32>
    %178 = arith.addf %177, %1 : vector<1x128xf32>
    %179 = arith.mulf %165, %178 : vector<1x128xf32>
    %180 = arith.addf %176, %179 : vector<1x128xf32>
    %181 = math.tanh %180 : vector<1x128xf32>
    %182 = arith.subf %154, %181 : vector<1x128xf32>
    %183 = arith.mulf %175, %182 : vector<1x128xf32>
    %184 = arith.addf %181, %183 : vector<1x128xf32>
    %cst_48 = arith.constant dense<0.000000e+00> : vector<1x384xf32>
    %185 = tpu.matmul %184, %0, %cst_48 {dimension_numbers = #tpu.dot_dimension_numbers<[1], [0], [0], [1], [0, 0, 1, 1], [], []>} : vector<1x128xf32>, vector<128x384xf32>, vector<1x384xf32> -> vector<1x384xf32>
    %186 = vector.extract_strided_slice %26 {offsets = [0, 0], sizes = [1, 128], strides = [1, 1]} : vector<1x384xf32> to vector<1x128xf32>
    %187 = vector.extract_strided_slice %185 {offsets = [0, 0], sizes = [1, 128], strides = [1, 1]} : vector<1x384xf32> to vector<1x128xf32>
    %188 = arith.addf %186, %187 : vector<1x128xf32>
    %cst_49 = arith.constant 5.000000e-01 : f32
    %189 = vector.broadcast %cst_49 : f32 to vector<1x128xf32>
    %190 = arith.mulf %189, %188 : vector<1x128xf32>
    %191 = math.tanh %190 : vector<1x128xf32>
    %cst_50 = arith.constant 5.000000e-01 : f32
    %192 = vector.broadcast %cst_50 : f32 to vector<1x128xf32>
    %193 = arith.mulf %192, %191 : vector<1x128xf32>
    %cst_51 = arith.constant 5.000000e-01 : f32
    %194 = vector.broadcast %cst_51 : f32 to vector<1x128xf32>
    %195 = arith.addf %193, %194 : vector<1x128xf32>
    %196 = vector.extract_strided_slice %26 {offsets = [0, 128], sizes = [1, 128], strides = [1, 1]} : vector<1x384xf32> to vector<1x128xf32>
    %197 = vector.extract_strided_slice %185 {offsets = [0, 128], sizes = [1, 128], strides = [1, 1]} : vector<1x384xf32> to vector<1x128xf32>
    %198 = arith.addf %196, %197 : vector<1x128xf32>
    %cst_52 = arith.constant 5.000000e-01 : f32
    %199 = vector.broadcast %cst_52 : f32 to vector<1x128xf32>
    %200 = arith.mulf %199, %198 : vector<1x128xf32>
    %201 = math.tanh %200 : vector<1x128xf32>
    %cst_53 = arith.constant 5.000000e-01 : f32
    %202 = vector.broadcast %cst_53 : f32 to vector<1x128xf32>
    %203 = arith.mulf %202, %201 : vector<1x128xf32>
    %cst_54 = arith.constant 5.000000e-01 : f32
    %204 = vector.broadcast %cst_54 : f32 to vector<1x128xf32>
    %205 = arith.addf %203, %204 : vector<1x128xf32>
    %206 = vector.extract_strided_slice %26 {offsets = [0, 256], sizes = [1, 128], strides = [1, 1]} : vector<1x384xf32> to vector<1x128xf32>
    %207 = vector.extract_strided_slice %185 {offsets = [0, 256], sizes = [1, 128], strides = [1, 1]} : vector<1x384xf32> to vector<1x128xf32>
    %208 = arith.addf %207, %1 : vector<1x128xf32>
    %209 = arith.mulf %195, %208 : vector<1x128xf32>
    %210 = arith.addf %206, %209 : vector<1x128xf32>
    %211 = math.tanh %210 : vector<1x128xf32>
    %212 = arith.subf %184, %211 : vector<1x128xf32>
    %213 = arith.mulf %205, %212 : vector<1x128xf32>
    %214 = arith.addf %211, %213 : vector<1x128xf32>
    %cst_55 = arith.constant dense<0.000000e+00> : vector<1x384xf32>
    %215 = tpu.matmul %214, %0, %cst_55 {dimension_numbers = #tpu.dot_dimension_numbers<[1], [0], [0], [1], [0, 0, 1, 1], [], []>} : vector<1x128xf32>, vector<128x384xf32>, vector<1x384xf32> -> vector<1x384xf32>
    %216 = vector.extract_strided_slice %30 {offsets = [0, 0], sizes = [1, 128], strides = [1, 1]} : vector<1x384xf32> to vector<1x128xf32>
    %217 = vector.extract_strided_slice %215 {offsets = [0, 0], sizes = [1, 128], strides = [1, 1]} : vector<1x384xf32> to vector<1x128xf32>
    %218 = arith.addf %216, %217 : vector<1x128xf32>
    %cst_56 = arith.constant 5.000000e-01 : f32
    %219 = vector.broadcast %cst_56 : f32 to vector<1x128xf32>
    %220 = arith.mulf %219, %218 : vector<1x128xf32>
    %221 = math.tanh %220 : vector<1x128xf32>
    %cst_57 = arith.constant 5.000000e-01 : f32
    %222 = vector.broadcast %cst_57 : f32 to vector<1x128xf32>
    %223 = arith.mulf %222, %221 : vector<1x128xf32>
    %cst_58 = arith.constant 5.000000e-01 : f32
    %224 = vector.broadcast %cst_58 : f32 to vector<1x128xf32>
    %225 = arith.addf %223, %224 : vector<1x128xf32>
    %226 = vector.extract_strided_slice %30 {offsets = [0, 128], sizes = [1, 128], strides = [1, 1]} : vector<1x384xf32> to vector<1x128xf32>
    %227 = vector.extract_strided_slice %215 {offsets = [0, 128], sizes = [1, 128], strides = [1, 1]} : vector<1x384xf32> to vector<1x128xf32>
    %228 = arith.addf %226, %227 : vector<1x128xf32>
    %cst_59 = arith.constant 5.000000e-01 : f32
    %229 = vector.broadcast %cst_59 : f32 to vector<1x128xf32>
    %230 = arith.mulf %229, %228 : vector<1x128xf32>
    %231 = math.tanh %230 : vector<1x128xf32>
    %cst_60 = arith.constant 5.000000e-01 : f32
    %232 = vector.broadcast %cst_60 : f32 to vector<1x128xf32>
    %233 = arith.mulf %232, %231 : vector<1x128xf32>
    %cst_61 = arith.constant 5.000000e-01 : f32
    %234 = vector.broadcast %cst_61 : f32 to vector<1x128xf32>
    %235 = arith.addf %233, %234 : vector<1x128xf32>
    %236 = vector.extract_strided_slice %30 {offsets = [0, 256], sizes = [1, 128], strides = [1, 1]} : vector<1x384xf32> to vector<1x128xf32>
    %237 = vector.extract_strided_slice %215 {offsets = [0, 256], sizes = [1, 128], strides = [1, 1]} : vector<1x384xf32> to vector<1x128xf32>
    %238 = arith.addf %237, %1 : vector<1x128xf32>
    %239 = arith.mulf %225, %238 : vector<1x128xf32>
    %240 = arith.addf %236, %239 : vector<1x128xf32>
    %241 = math.tanh %240 : vector<1x128xf32>
    %242 = arith.subf %214, %241 : vector<1x128xf32>
    %243 = arith.mulf %235, %242 : vector<1x128xf32>
    %244 = arith.addf %241, %243 : vector<1x128xf32>
    %cst_62 = arith.constant dense<0.000000e+00> : vector<1x384xf32>
    %245 = tpu.matmul %244, %0, %cst_62 {dimension_numbers = #tpu.dot_dimension_numbers<[1], [0], [0], [1], [0, 0, 1, 1], [], []>} : vector<1x128xf32>, vector<128x384xf32>, vector<1x384xf32> -> vector<1x384xf32>
    %246 = vector.extract_strided_slice %34 {offsets = [0, 0], sizes = [1, 128], strides = [1, 1]} : vector<1x384xf32> to vector<1x128xf32>
    %247 = vector.extract_strided_slice %245 {offsets = [0, 0], sizes = [1, 128], strides = [1, 1]} : vector<1x384xf32> to vector<1x128xf32>
    %248 = arith.addf %246, %247 : vector<1x128xf32>
    %cst_63 = arith.constant 5.000000e-01 : f32
    %249 = vector.broadcast %cst_63 : f32 to vector<1x128xf32>
    %250 = arith.mulf %249, %248 : vector<1x128xf32>
    %251 = math.tanh %250 : vector<1x128xf32>
    %cst_64 = arith.constant 5.000000e-01 : f32
    %252 = vector.broadcast %cst_64 : f32 to vector<1x128xf32>
    %253 = arith.mulf %252, %251 : vector<1x128xf32>
    %cst_65 = arith.constant 5.000000e-01 : f32
    %254 = vector.broadcast %cst_65 : f32 to vector<1x128xf32>
    %255 = arith.addf %253, %254 : vector<1x128xf32>
    %256 = vector.extract_strided_slice %34 {offsets = [0, 128], sizes = [1, 128], strides = [1, 1]} : vector<1x384xf32> to vector<1x128xf32>
    %257 = vector.extract_strided_slice %245 {offsets = [0, 128], sizes = [1, 128], strides = [1, 1]} : vector<1x384xf32> to vector<1x128xf32>
    %258 = arith.addf %256, %257 : vector<1x128xf32>
    %cst_66 = arith.constant 5.000000e-01 : f32
    %259 = vector.broadcast %cst_66 : f32 to vector<1x128xf32>
    %260 = arith.mulf %259, %258 : vector<1x128xf32>
    %261 = math.tanh %260 : vector<1x128xf32>
    %cst_67 = arith.constant 5.000000e-01 : f32
    %262 = vector.broadcast %cst_67 : f32 to vector<1x128xf32>
    %263 = arith.mulf %262, %261 : vector<1x128xf32>
    %cst_68 = arith.constant 5.000000e-01 : f32
    %264 = vector.broadcast %cst_68 : f32 to vector<1x128xf32>
    %265 = arith.addf %263, %264 : vector<1x128xf32>
    %266 = vector.extract_strided_slice %34 {offsets = [0, 256], sizes = [1, 128], strides = [1, 1]} : vector<1x384xf32> to vector<1x128xf32>
    %267 = vector.extract_strided_slice %245 {offsets = [0, 256], sizes = [1, 128], strides = [1, 1]} : vector<1x384xf32> to vector<1x128xf32>
    %268 = arith.addf %267, %1 : vector<1x128xf32>
    %269 = arith.mulf %255, %268 : vector<1x128xf32>
    %270 = arith.addf %266, %269 : vector<1x128xf32>
    %271 = math.tanh %270 : vector<1x128xf32>
    %272 = arith.subf %244, %271 : vector<1x128xf32>
    %273 = arith.mulf %265, %272 : vector<1x128xf32>
    %274 = arith.addf %271, %273 : vector<1x128xf32>
    %275 = tpu.concatenate %64, %94, %124, %154, %184, %214, %244, %274 in 0 : vector<1x128xf32>, vector<1x128xf32>, vector<1x128xf32>, vector<1x128xf32>, vector<1x128xf32>, vector<1x128xf32>, vector<1x128xf32>, vector<1x128xf32> -> vector<8x128xf32>
    %c0_69 = arith.constant 0 : index
    %c0_70 = arith.constant 0 : index
    %c0_71 = arith.constant 0 : index
    %276 = vector.load %arg6[%c0_69, %c0_70, %c0_71] : memref<1x8x128xf32, #tpu.memory_space<vmem>>, vector<1x8x128xf32>
    %277 = vector.shape_cast %276 : vector<1x8x128xf32> to vector<8x128xf32>
    %278 = vector.shape_cast %275 : vector<8x128xf32> to vector<1x8x128xf32>
    tpu.vector_store %arg6[%c0_69, %c0_70, %c0_71], %278 {strides = array<i32>} : memref<1x8x128xf32, #tpu.memory_space<vmem>>, vector<1x8x128xf32>,
    return
  }
  func.func @transform_0(%arg0: i32, %arg1: memref<1x8xi32, #tpu.memory_space<smem>>) -> (i32, i32) {
    %c0_i32 = arith.constant 0 : i32
    %c0_i32_0 = arith.constant 0 : i32
    %c0_i32_1 = arith.constant 0 : i32
    return %c0_i32, %c0_i32_0 : i32, i32
  }
  func.func @transform_1(%arg0: i32, %arg1: memref<1x8xi32, #tpu.memory_space<smem>>) -> (i32, i32) {
    %c0_i32 = arith.constant 0 : i32
    %c0_i32_0 = arith.constant 0 : i32
    %c0_i32_1 = arith.constant 0 : i32
    return %c0_i32, %c0_i32_0 : i32, i32
  }
  func.func @transform_2(%arg0: i32, %arg1: memref<1x8xi32, #tpu.memory_space<smem>>) -> (i32, i32) {
    %c0_i32 = arith.constant 0 : i32
    %c0_i32_0 = arith.constant 0 : i32
    %c0_i32_1 = arith.constant 0 : i32
    return %c0_i32, %c0_i32_0 : i32, i32
  }
  func.func @transform_3(%arg0: i32, %arg1: memref<1x8xi32, #tpu.memory_space<smem>>) -> (i32, i32) {
    %c0_i32 = arith.constant 0 : i32
    %c0_i32_0 = arith.constant 0 : i32
    %c0_i32_1 = arith.constant 0 : i32
    return %c0_i32, %c0_i32_0 : i32, i32
  }
  func.func @transform_4(%arg0: i32, %arg1: memref<1x8xi32, #tpu.memory_space<smem>>) -> (i32, i32, i32) {
    %c0_i32 = arith.constant 0 : i32
    %c0_i32_0 = arith.constant 0 : i32
    %c0_i32_1 = arith.constant 0 : i32
    return %arg0, %c0_i32, %c0_i32_0 : i32, i32, i32
  }
}

</mosaic_0001>

<bundles_post_ra>
// kernel: encoder_forward.1
= control target key start
LH: loop header
LB: loop body
LE: loop exit
PB: predicated region body
PF: predicated region fallthrough
CT: control target
= control target key end

     0   :  { %s3009_s0 = inlined_call_operand.vmem [shape: s32[1,8], index: 0, kind: input, shape index: {}]   ;;  %s3010_s1 = inlined_call_operand.hbm [shape: f32[50,384], index: 1, kind: input, shape index: {}]   ;;  %s3011_s2 = inlined_call_operand.hbm [shape: f32[128,384], index: 2, kind: input, shape index: {}]   ;;  %s3012_s3 = inlined_call_operand.vmem [shape: f32[1,128], index: 3, kind: input, shape index: {}]   ;;  %s3013_s4 = inlined_call_operand.vmem [shape: f32[1,128], index: 4, kind: input, shape index: {}]   ;;  %s3014_s5 = inlined_call_operand.vmem [shape: f32[1,8,128], index: 5, kind: output, shape index: {}]  }
   0x1   :  { %s10_s20 = sshll.u32 %s3009_s0, 4  ;;  %s11_s20 = int_to_ptr.vmem [resolvable:$true] %s10_s20 }
   0x2   :  { %s2116_s21 = scalar_lea.vmem %s11_s20, 16  ;;  %p2121_p1 = scmp.lt.s32.totalorder %s11_s20, %s11_s20 }
   0x3   :  { %p2117_p0 = scmp.ne.s32.totalorder %s11_s20, %s2116_s21  ;;  %p2122_p2 = scmp.lt.s32.totalorder %s2116_s21, %s2116_s21 }
   0x5   :  { %p2123_p3 = por %p2122_p2, %p2121_p1 }
   0x7   :  { %p2124_p4 = pnand %p2123_p3, %p2117_p0 }
   0x9   :  { %2127 = shalt.err (!%p2124_p4)  }
   0xa   :  { %s2174_s22 = smov [#allocation3]  }
   0xb   :  { %13 = dma.vmem_to_smem %s11_s20, 16, %s2174_s22, [#allocation2] }
   0xc   :  { %2168 = dma.done.wait [#allocation2], 16 }
   0xd   :  { %2169 = vsyncadd [#allocation2], 4294967280 }
   0xe   :  { %15 = sfence }
   0xf   :  { %16 = vsyncpa [#allocation5], 0 }
  0x10   :  { %17 = vsyncpa [#allocation7], 0  ;;  %s2175_s23 = smov [#allocation4]  }
  0x11   :  { %s23_s24 = sshll.u32 %s2175_s23, 4  ;;  %s24_s24 = int_to_ptr.vmem [resolvable:$true] %s23_s24 }
  0x12   :  { %s2136_s25 = scalar_lea.vmem %s24_s24, 2688  ;;  %p2141_p6 = scmp.lt.s32.totalorder %s24_s24, %s24_s24 }
  0x13   :  { %p2137_p5 = scmp.ne.s32.totalorder %s24_s24, %s2136_s25  ;;  %p2142_p7 = scmp.lt.s32.totalorder %s2136_s25, %s2136_s25 }
  0x15   :  { %p2143_p8 = por %p2142_p7, %p2141_p6 }
  0x17   :  { %p2144_p9 = pnand %p2143_p8, %p2137_p5 }
  0x19   :  { %2147 = shalt.err (!%p2144_p9)
}
  0x1a   :  { %s2176_s0 = smov 384   ;;  %s2177_s26 = smov 24  }
  0x1b   :  { %29 = dma.hbm_to_vmem [thread:$0]  %s3010_s1, 2688, %s24_s24, [#allocation5], %s2176_s0, %s2176_s0, %s2177_s26  }
  0x1c   :  { %s2178_s29 = smov [#allocation6]  }
  0x1d   :  { %s35_s30 = sshll.u32 %s2178_s29, 4  ;;  %s36_s30 = int_to_ptr.vmem [resolvable:$true] %s35_s30 }
  0x1e   :  { %s2156_s6 = scalar_lea.vmem %s36_s30, 6144  ;;  %p2161_p11 = scmp.lt.s32.totalorder %s36_s30, %s36_s30 }
  0x1f   :  { %p2157_p10 = scmp.ne.s32.totalorder %s36_s30, %s2156_s6  ;;  %p2162_p12 = scmp.lt.s32.totalorder %s2156_s6, %s2156_s6 }
  0x21   :  { %p2163_p13 = por %p2162_p12, %p2161_p11 }
  0x23   :  { %p2164_p0 = pnand %p2163_p13, %p2157_p10 }
  0x25   :  { %2167 = shalt.err (!%p2164_p0)
}
  0x26   :  { %41 = dma.hbm_to_vmem [thread:$0]  %s3011_s2, 6144, %s36_s30, [#allocation7], %s2176_s0, %s2176_s0, %s2177_s26  }
  0x27   :  { %2170 = dma.done.wait [#allocation5], 2688  }
  0x28   :  { %2171 = vsyncadd [#allocation5], 4294964608 }
  0x29   :  { %2172 = dma.done.wait [#allocation7], 6144  }
  0x2a   :  { %2173 = vsyncadd [#allocation7], 4294961152  ;;  %v3015_v0 = vmov 0.0   ;;  %vm2180_vm0 = vmmov 0   ;;  %v2224_v1 = vld [vmem:[#allocation6 + $0x170] sm:$0xff]  ;;  %v2226_v2 = vld [vmem:[#allocation6 + $0x168] sm:$0xff] }
  0x2b   :  { %1732 = vmatprep.subr.mxu1 %v3015_v0  ;;  %254 = vmatprep.mubr.f32.mxu0 %v3015_v0  ;;  %3041 = vst [vmem:[#allocation11_spill] sm:$0xff] %v2224_v1  ;;  %v2228_v3 = vld [vmem:[#allocation6 + $0x158] sm:$0xff]  ;;  %v2231_v4 = vld [vmem:[#allocation6 + $0x150] sm:$0xff]  ;;  %v2234_v5 = vld [vmem:[#allocation6 + $0x140] sm:$0xff]  ;;  %s1582_s16 = sld [smem:[#allocation3 + $0x1]]  ;;  %vm1536_vm1 = vcmask 1040384  }
  0x2c   :  { %1764 = vmatprep.mubr.msk.f32.mxu1 %vm2180_vm0, %v3015_v0  ;;  %190 = vmatprep.subr.mxu0 %v2224_v1  ;;  %v2237_v6 = vld [vmem:[#allocation6 + $0x138] sm:$0xff]  ;;  %v2240_v7 = vld [vmem:[#allocation6 + $0x128] sm:$0xff]  ;;  %v2243_v8 = vld [vmem:[#allocation6 + $0x120] sm:$0xff]  ;;  %s1584_s22 = sld [smem:[#allocation3 + $0x2]]  ;;  %vm1538_vm2 = vcmask 1041408   ;;  %vm1540_vm3 = vcmask 1042432  }
  0x2d   :  { %191 = vmatpush1.msra.mxu0 %v2226_v2  ;;  %v2246_v9 = vld [vmem:[#allocation6 + $0x110] sm:$0xff]  ;;  %v2248_v10 = vld [vmem:[#allocation6 + $0x178] sm:$0xff]  ;;  %v2251_v11 = vld [vmem:[#allocation6 + $0x108] sm:$0xff]  ;;  %s1586_s27 = sld [smem:[#allocation3 + $0x3]]  ;;  %vm1542_vm4 = vcmask 1043456   ;;  %vm1544_vm5 = vcmask 1044480  }
  0x2e   :  { %192 = vmatprep.subr.mxu0 %v2228_v3  ;;  %1733 = vmatpush3.msra.mxu1 %v2248_v10  ;;  %v2254_v12 = vld [vmem:[#allocation6 + $0x160] sm:$0xff]  ;;  %v2257_v13 = vld [vmem:[#allocation6 + $0xf8] sm:$0xff]  ;;  %v2260_v14 = vld [vmem:[#allocation6 + $0x148] sm:$0xff]  ;;  %s1588_s8 = sld [smem:[#allocation3 + $0x4]]  ;;  %vm1546_vm6 = vcmask 1045504   ;;  %vm1548_vm7 = vcmask 1046528  }
  0x2f   :  { %193 = vmatpush1.msra.mxu0 %v2231_v4  ;;  %1734 = vmatprep.subr.mxu1 %v3015_v0  ;;  %v2263_v15 = vld [vmem:[#allocation6 + $0xf0] sm:$0xff]  ;;  %v2267_v16 = vld [vmem:[#allocation6 + $0xe0] sm:$0xff]  ;;  %v2273_v18 = vld [vmem:[#allocation6 + $0xd8] sm:$0xff] }
  0x30   :  { %194 = vmatprep.subr.mxu0 %v2234_v5  ;;  %1735 = vmatpush3.msra.mxu1 %v2254_v12  ;;  %v2270_v17 = vld [vmem:[#allocation6 + $0x130] sm:$0xff]  ;;  %v2277_v19 = vld [vmem:[#allocation6 + $0xc8] sm:$0xff]  ;;  %v2280_v20 = vld [vmem:[#allocation6 + $0x118] sm:$0xff] }
  0x31   :  { %195 = vmatpush1.msra.mxu0 %v2237_v6  ;;  %1736 = vmatprep.subr.mxu1 %v3015_v0  ;;  %v2283_v21 = vld [vmem:[#allocation6 + $0xc0] sm:$0xff]  ;;  %v2287_v22 = vld [vmem:[#allocation6 + $0xb0] sm:$0xff]  ;;  %v2293_v24 = vld [vmem:[#allocation6 + $0xa8] sm:$0xff]  ;;  %s115_s17 = sshra.s32 %s1582_s16, 3  ;;  %s118_s19 = sand.u32 7, %s1582_s16 }
  0x32   :  { %196 = vmatprep.subr.mxu0 %v2240_v7  ;;  %1737 = vmatpush3.msra.mxu1 %v2260_v14  ;;  %v2290_v23 = vld [vmem:[#allocation6 + $0x100] sm:$0xff]  ;;  %v2297_v25 = vld [vmem:[#allocation6 + $0x98] sm:$0xff]  ;;  %v2300_v26 = vld [vmem:[#allocation6 + $0xe8] sm:$0xff]  ;;  %s1583_s18 = smul.u32 24, %s115_s17  ;;  %s126_s23 = sshra.s32 %s1584_s22, 3 }
  0x33   :  { %197 = vmatpush1.msra.mxu0 %v2243_v8  ;;  %1738 = vmatprep.subr.mxu1 %v3015_v0  ;;  %v2303_v27 = vld [vmem:[#allocation6 + $0x90] sm:$0xff]  ;;  %v2307_v28 = vld [vmem:[#allocation6 + $0x80] sm:$0xff]  ;;  %v2313_v30 = vld [vmem:[#allocation6 + $0x78] sm:$0xff]  ;;  %s1585_s24 = smul.u32 24, %s126_s23  ;;  %s129_s25 = sand.u32 7, %s1584_s22 }
  0x34   :  { %198 = vmatprep.subr.mxu0 %v2246_v9  ;;  %1739 = vmatpush3.msra.mxu1 %v2270_v17  ;;  %v2310_v29 = vld [vmem:[#allocation6 + $0xd0] sm:$0xff]  ;;  %v2317_v31 = vld [vmem:[#allocation6 + $0x68] sm:$0xff]  ;;  %v2320_v32 = vld [vmem:[#allocation6 + $0xb8] sm:$0xff]  ;;  %s121_s20 = sadd.s32 %s1583_s18, %s118_s19  ;;  %s137_s28 = sshra.s32 %s1586_s27, 3 }
  0x35   :  { %199 = vmatpush1.msra.mxu0 %v2251_v11  ;;  %1740 = vmatprep.subr.mxu1 %v3015_v0  ;;  %v2323_v33 = vld [vmem:[#allocation6 + $0x60] sm:$0xff]  ;;  %v2327_v34 = vld [vmem:[#allocation6 + $0x50] sm:$0xff]  ;;  %v2333_v36 = vld [vmem:[#allocation6 + $0x48] sm:$0xff]  ;;  %s122_s21 = scalar_lea.vmem [#allocation4], %s121_s20  ;;  %s132_s0 = sadd.s32 %s1585_s24, %s129_s25 }
  0x36   :  { %200 = vmatprep.subr.mxu0 %v2257_v13  ;;  %1741 = vmatpush3.msra.mxu1 %v2280_v20  ;;  %v2330_v35 = vld [vmem:[#allocation6 + $0xa0] sm:$0xff]  ;;  %v2337_v37 = vld [vmem:[#allocation6 + $0x38] sm:$0xff]  ;;  %v2340_v38 = vld [vmem:[#allocation6 + $0x88] sm:$0xff]  ;;  %s133_s26 = scalar_lea.vmem [#allocation4], %s132_s0  ;;  %s1587_s29 = smul.u32 24, %s137_s28 }
  0x37   :  { %201 = vmatpush1.msra.mxu0 %v2263_v15  ;;  %1742 = vmatprep.subr.mxu1 %v3015_v0  ;;  %v2343_v39 = vld [vmem:[#allocation6 + $0x30] sm:$0xff]  ;;  %v2347_v40 = vld [vmem:[#allocation6 + $0x20] sm:$0xff]  ;;  %v2353_v42 = vld [vmem:[#allocation6 + $0x18] sm:$0xff]  ;;  %s140_s30 = sand.u32 7, %s1586_s27  ;;  %s148_s1 = sshra.s32 %s1588_s8, 3 }
  0x38   :  { %202 = vmatprep.subr.mxu0 %v2267_v16  ;;  %1743 = vmatpush3.msra.mxu1 %v2290_v23  ;;  %3042 = vst [vmem:[#allocation12_spill] sm:$0xff] %v2347_v40  ;;  %v2350_v41 = vld [vmem:[#allocation6 + $0x70] sm:$0xff]  ;;  %3043 = vst [vmem:[#allocation13_spill] sm:$0xff] %v2353_v42  ;;  %v2357_v43 = vld [vmem:[#allocation6 + $0x8] sm:$0xff]  ;;  %s143_s6 = sadd.s32 %s1587_s29, %s140_s30  ;;  %s1589_s2 = smul.u32 24, %s148_s1 }
  0x39   :  { %203 = vmatpush1.msra.mxu0 %v2273_v18  ;;  %1744 = vmatprep.subr.mxu1 %v3015_v0  ;;  %3044 = vst [vmem:[#allocation14_spill] sm:$0xff] %v2357_v43  ;;  %v2360_v44 = vld [vmem:[#allocation6 + $0x58] sm:$0xff]  ;;  %v2363_v45 = vld [vmem:[#allocation6] sm:$0xff]  ;;  %v2379_v48 = vld [vmem:[#allocation6 + $0x28] sm:$0xff]  ;;  %s144_s7 = scalar_lea.vmem [#allocation4], %s143_s6  ;;  %s1592_s17 = sld [smem:[#allocation3 + $0x6]] }
  0x3a   :  { %204 = vmatprep.subr.mxu0 %v2277_v19  ;;  %1745 = vmatpush3.msra.mxu1 %v2300_v26  ;;  %3045 = vst [vmem:[#allocation15_spill] sm:$0xff] %v2363_v45  ;;  %v2370_v46 = vld [vmem:[%s3013_s4] sm:$0x1]  ;;  %v2373_v47 = vld [vmem:[#allocation6 + $0x40] sm:$0xff]  ;;  %3046 = vst [vmem:[#allocation16_spill] sm:$0xff] %v2379_v48  ;;  %s103_s4 = sld [smem:[#allocation3]] }
  0x3b   :  { %205 = vmatpush1.msra.mxu0 %v2283_v21  ;;  %1746 = vmatprep.subr.mxu1 %v3015_v0  ;;  %v2384_v49 = vld [vmem:[#allocation6 + $0x10] sm:$0xff]  ;;  %v2462_v59 = vld [vmem:[%s3012_s3] sm:$0x1]  ;;  %s1594_s25 = sld [smem:[#allocation3 + $0x7]] }
  0x3c   :  { %206 = vmatprep.subr.mxu0 %v2287_v22  ;;  %1747 = vmatpush3.msra.mxu1 %v2310_v29  ;;  %3047 = vst [vmem:[#allocation17_spill] sm:$0xff] %v2384_v49 }
  0x3d   :  { %207 = vmatpush1.msra.mxu0 %v2293_v24  ;;  %1748 = vmatprep.subr.mxu1 %v3015_v0 }
  0x3e   :  { %208 = vmatprep.subr.mxu0 %v2297_v25  ;;  %1749 = vmatpush3.msra.mxu1 %v2320_v32 }
  0x3f   :  { %209 = vmatpush1.msra.mxu0 %v2303_v27  ;;  %1750 = vmatprep.subr.mxu1 %v3015_v0  ;;  %s170_s18 = sshra.s32 %s1592_s17, 3  ;;  %s173_s20 = sand.u32 7, %s1592_s17 }
  0x40   :  { %210 = vmatprep.subr.mxu0 %v2307_v28  ;;  %1751 = vmatpush3.msra.mxu1 %v2330_v35  ;;  %s104_s9 = sshra.s32 %s103_s4, 3  ;;  %s107_s11 = sand.u32 7, %s103_s4 }
  0x41   :  { %211 = vmatpush1.msra.mxu0 %v2313_v30  ;;  %1752 = vmatprep.subr.mxu1 %v3015_v0  ;;  %s1581_s10 = smul.u32 24, %s104_s9  ;;  %s151_s4 = sand.u32 7, %s1588_s8 }
  0x42   :  { %212 = vmatprep.subr.mxu0 %v2317_v31  ;;  %1753 = vmatpush3.msra.mxu1 %v2340_v38  ;;  %s154_s9 = sadd.s32 %s1589_s2, %s151_s4  ;;  %s1593_s19 = smul.u32 24, %s170_s18 }
  0x43   :  { %213 = vmatpush1.msra.mxu0 %v2323_v33  ;;  %1754 = vmatprep.subr.mxu1 %v3015_v0  ;;  %s110_s12 = sadd.s32 %s1581_s10, %s107_s11  ;;  %s155_s10 = scalar_lea.vmem [#allocation4], %s154_s9 }
  0x44   :  { %214 = vmatprep.subr.mxu0 %v2327_v34  ;;  %1755 = vmatpush3.msra.mxu1 %v2350_v41  ;;  %s111_s13 = scalar_lea.vmem [#allocation4], %s110_s12  ;;  %s1590_s11 = sld [smem:[#allocation3 + $0x5]] }
  0x45   :  { %215 = vmatpush1.msra.mxu0 %v2333_v36  ;;  %1756 = vmatprep.subr.mxu1 %v3015_v0  ;;  %v112_v50 = vld [vmem:[%s111_s13] ss:$8 sm:$0x7]  ;;  %s181_s0 = sshra.s32 %s1594_s25, 3  ;;  %s184_s27 = sand.u32 7, %s1594_s25 }
  0x46   :  { %216 = vmatprep.subr.mxu0 %v2337_v37  ;;  %1757 = vmatpush3.msra.mxu1 %v2360_v44  ;;  %v337_v56 = vrot.slane %v112_v50, 1 }
  0x47   :  { %217 = vmatpush1.msra.mxu0 %v2343_v39  ;;  %1758 = vmatprep.subr.mxu1 %v3015_v0 }
  0x48   :  { %218 = vmatprep.subr.mxu0 %v2347_v40  ;;  %1759 = vmatpush3.msra.mxu1 %v2373_v47 }
  0x49   :  { %219 = vmatpush1.msra.mxu0 %v2353_v42  ;;  %1760 = vmatprep.subr.mxu1 %v3015_v0 }
  0x4a   :  { %220 = vmatprep.subr.mxu0 %v2357_v43  ;;  %1761 = vmatpush3.msra.mxu1 %v2379_v48  ;;  %s159_s12 = sshra.s32 %s1590_s11, 3  ;;  %s162_s14 = sand.u32 7, %s1590_s11 }
  0x4b   :  { %221 = vmatpush1.msra.mxu0 %v2363_v45  ;;  %1762 = vmatprep.subr.mxu1 %v3015_v0  ;;  %s1591_s13 = smul.u32 24, %s159_s12 }
  0x4c   :  { %255 = vmatmul.mubr.f32.vlgmr.msra.gmra.mxu0 %v2370_v46  ;;  %353 = vmatprep.subr.mxu0 %v2224_v1 }
  0x4d   :  { %354 = vmatpush1.msra.mxu0 %v2226_v2  ;;  %1763 = vmatpush3.msra.mxu1 %v2384_v49  ;;  %s165_s15 = sadd.s32 %s1591_s13, %s162_s14 }
  0x4e   :  { %355 = vmatprep.subr.mxu0 %v2228_v3  ;;  %1765 = vmatmul.mubr.f32.vlgmr.msra.gmra.mxu1 %v2370_v46  ;;  %s166_s16 = scalar_lea.vmem [#allocation4], %s165_s15 }
  0x4f   :  { %356 = vmatpush1.msra.mxu0 %v2231_v4  ;;  %1767 = vmatprep.subr.mxu1 %v3015_v0 }
  0x50   :  { %1768 = vmatpush3.msra.mxu1 %v2248_v10  ;;  %357 = vmatprep.subr.mxu0 %v2234_v5 }
  0x51   :  { %1769 = vmatprep.subr.mxu1 %v3015_v0  ;;  %358 = vmatpush1.msra.mxu0 %v2237_v6 }
  0x52   :  { %1770 = vmatpush3.msra.mxu1 %v2254_v12  ;;  %359 = vmatprep.subr.mxu0 %v2240_v7 }
  0x53   :  { %1771 = vmatprep.subr.mxu1 %v3015_v0  ;;  %360 = vmatpush1.msra.mxu0 %v2243_v8 }
  0x54   :  { %1772 = vmatpush3.msra.mxu1 %v2260_v14  ;;  %361 = vmatprep.subr.mxu0 %v2246_v9 }
  0x55   :  { %1773 = vmatprep.subr.mxu1 %v3015_v0  ;;  %362 = vmatpush1.msra.mxu0 %v2251_v11 }
  0x56   :  { %1774 = vmatpush3.msra.mxu1 %v2270_v17  ;;  %363 = vmatprep.subr.mxu0 %v2257_v13 }
  0x57   :  { %1775 = vmatprep.subr.mxu1 %v3015_v0  ;;  %364 = vmatpush1.msra.mxu0 %v2263_v15 }
  0x58   :  { %1776 = vmatpush3.msra.mxu1 %v2280_v20  ;;  %365 = vmatprep.subr.mxu0 %v2267_v16 }
  0x59   :  { %1777 = vmatprep.subr.mxu1 %v3015_v0  ;;  %366 = vmatpush1.msra.mxu0 %v2273_v18 }
  0x5a   :  { %1778 = vmatpush3.msra.mxu1 %v2290_v23  ;;  %367 = vmatprep.subr.mxu0 %v2277_v19 }
  0x5b   :  { %1779 = vmatprep.subr.mxu1 %v3015_v0  ;;  %368 = vmatpush1.msra.mxu0 %v2283_v21 }
  0x5c   :  { %1780 = vmatpush3.msra.mxu1 %v2300_v26  ;;  %369 = vmatprep.subr.mxu0 %v2287_v22 }
  0x5d   :  { %1781 = vmatprep.subr.mxu1 %v3015_v0  ;;  %370 = vmatpush1.msra.mxu0 %v2293_v24 }
  0x5e   :  { %1782 = vmatpush3.msra.mxu1 %v2310_v29  ;;  %371 = vmatprep.subr.mxu0 %v2297_v25 }
  0x5f   :  { %1783 = vmatprep.subr.mxu1 %v3015_v0  ;;  %372 = vmatpush1.msra.mxu0 %v2303_v27 }
  0x60   :  { %1784 = vmatpush3.msra.mxu1 %v2320_v32  ;;  %373 = vmatprep.subr.mxu0 %v2307_v28 }
  0x61   :  { %1785 = vmatprep.subr.mxu1 %v3015_v0  ;;  %374 = vmatpush1.msra.mxu0 %v2313_v30 }
  0x62   :  { %1786 = vmatpush3.msra.mxu1 %v2330_v35  ;;  %375 = vmatprep.subr.mxu0 %v2317_v31 }
  0x63   :  { %1787 = vmatprep.subr.mxu1 %v3015_v0  ;;  %376 = vmatpush1.msra.mxu0 %v2323_v33 }
  0x64   :  { %1788 = vmatpush3.msra.mxu1 %v2340_v38  ;;  %377 = vmatprep.subr.mxu0 %v2327_v34 }
  0x65   :  { %1789 = vmatprep.subr.mxu1 %v3015_v0  ;;  %378 = vmatpush1.msra.mxu0 %v2333_v36 }
  0x66   :  { %1790 = vmatpush3.msra.mxu1 %v2350_v41  ;;  %379 = vmatprep.subr.mxu0 %v2337_v37 }
  0x67   :  { %1791 = vmatprep.subr.mxu1 %v3015_v0  ;;  %380 = vmatpush1.msra.mxu0 %v2343_v39 }
  0x68   :  { %1792 = vmatpush3.msra.mxu1 %v2360_v44  ;;  %381 = vmatprep.subr.mxu0 %v2347_v40 }
  0x69   :  { %1793 = vmatprep.subr.mxu1 %v3015_v0  ;;  %382 = vmatpush1.msra.mxu0 %v2353_v42 }
  0x6a   :  { %1794 = vmatpush3.msra.mxu1 %v2373_v47  ;;  %383 = vmatprep.subr.mxu0 %v2357_v43 }
  0x6b   :  { %1795 = vmatprep.subr.mxu1 %v3015_v0  ;;  %384 = vmatpush1.msra.mxu0 %v2363_v45 }
  0x6c   :  { %1796 = vmatpush3.msra.mxu1 %v2379_v48  ;;  %417 = vmatprep.mubr.f32.mxu0 %v3015_v0 }
  0x6d   :  { %1797 = vmatprep.subr.mxu1 %v3015_v0  ;;  %1799 = vmatprep.mubr.msk.f32.mxu1 %vm2180_vm0, %v3015_v0 }
  0x6e   :  { %1798 = vmatpush3.msra.mxu1 %v2384_v49  ;;  %516 = vmatprep.subr.mxu0 %v2224_v1 }
  0x6f   :  { %1802 = vmatprep.subr.mxu1 %v3015_v0  ;;  %v346_v0 = vrot.slane %v112_v50, 2 }
 0x10c   :  { %v256_v51 = vpop.f32.mrf.mxu0 }
 0x10d   :  { %v331_v52 = vadd.f32 %v256_v51, %v112_v50  ;;  %v123_v50 = vld [vmem:[%s122_s21] ss:$8 sm:$0x7]  ;;  %s176_s21 = sadd.s32 %s1593_s19, %s173_s20 }
 0x10e   :  { %v327_v54 = vpop.f32.mrf.mxu1  ;;  %v258_v57 = vpop.f32.mrf.mxu0  ;;  %s177_s22 = scalar_lea.vmem [#allocation4], %s176_s21 }
 0x10f   :  { %v332_v53 = vmul.f32 0.5, %v331_v52  ;;  %v339_v58 = vadd.f32 %v337_v56, %v258_v57  ;;  %v344_v63 = vadd.f32 %v327_v54, %v2462_v59 }
 0x110   :  { %v1766_v55 = vpop.f32.mrf.mxu1 }
 0x111   :  { %2019 = vtanh.f32 %v332_v53  ;;  %v340_v60 = vmul.f32 0.5, %v339_v58 }
 0x113   :  { %2021 = vtanh.f32 %v340_v60 }
 0x11e   :  { %v2020_v61 = vpop.eup %2019 }
 0x11f   :  { %v334_v62 = vmul.f32 0.5, %v2020_v61 }
 0x120   :  { %v2022_v55 = vpop.eup %2021 }
 0x121   :  { %v335_v51 = vadd.f32 0.5, %v334_v62  ;;  %v342_v1 = vmul.f32 0.5, %v2022_v55 }
 0x123   :  { %v345_v52 = vmul.f32 %v344_v63, %v335_v51  ;;  %v343_v56 = vadd.f32 0.5, %v342_v1  ;;  %v3050_v1 = vld [vmem:[#allocation14_spill] sm:$0xff]  ;;  %v500_v63 = vrot.slane %v123_v50, 1 }
 0x125   :  { %v348_v53 = vadd.f32 %v346_v0, %v345_v52  ;;  %v3049_v0 = vmov 0.0  }
 0x127   :  { %2023 = vtanh.f32 %v348_v53 }
 0x134   :  { %v2024_v49 = vpop.eup %2023 }
 0x135   :  { %v350_v57 = vsub.f32 %v2370_v46, %v2024_v49  ;;  %v3052_v46 = vld [vmem:[#allocation17_spill] sm:$0xff] }
 0x137   :  { %v351_v45 = vmul.f32 %v350_v57, %v343_v56  ;;  %v509_v57 = vrot.slane %v123_v50, 2 }
 0x139   :  { %v2466_v43 = vadd.f32 %v2024_v49, %v351_v45  ;;  %v3051_v45 = vld [vmem:[#allocation15_spill] sm:$0xff] }
 0x13a   :  { %v3053_v49 = vld [vmem:[#allocation11_spill] sm:$0xff] }
 0x13b   :  { %3048 = vst [vmem:[#allocation18_spill] sm:$0xff] %v2466_v43  ;;  %418 = vmatmul.mubr.f32.vlgmr.msra.gmra.mxu0 %v2466_v43  ;;  %1800 = vmatmul.mubr.f32.vlgmr.msra.gmra.mxu1 %v2466_v43 }
 0x13c   :  { %517 = vmatpush1.msra.mxu0 %v2226_v2  ;;  %1803 = vmatpush3.msra.mxu1 %v2248_v10 }
 0x13d   :  { %518 = vmatprep.subr.mxu0 %v2228_v3  ;;  %1804 = vmatprep.subr.mxu1 %v3049_v0 }
 0x13e   :  { %519 = vmatpush1.msra.mxu0 %v2231_v4  ;;  %1805 = vmatpush3.msra.mxu1 %v2254_v12 }
 0x13f   :  { %520 = vmatprep.subr.mxu0 %v2234_v5  ;;  %1806 = vmatprep.subr.mxu1 %v3049_v0 }
 0x140   :  { %521 = vmatpush1.msra.mxu0 %v2237_v6  ;;  %1807 = vmatpush3.msra.mxu1 %v2260_v14 }
 0x141   :  { %522 = vmatprep.subr.mxu0 %v2240_v7  ;;  %1808 = vmatprep.subr.mxu1 %v3049_v0 }
 0x142   :  { %523 = vmatpush1.msra.mxu0 %v2243_v8  ;;  %1809 = vmatpush3.msra.mxu1 %v2270_v17 }
 0x143   :  { %524 = vmatprep.subr.mxu0 %v2246_v9  ;;  %1810 = vmatprep.subr.mxu1 %v3049_v0 }
 0x144   :  { %525 = vmatpush1.msra.mxu0 %v2251_v11  ;;  %1811 = vmatpush3.msra.mxu1 %v2280_v20 }
 0x145   :  { %526 = vmatprep.subr.mxu0 %v2257_v13  ;;  %1812 = vmatprep.subr.mxu1 %v3049_v0 }
 0x146   :  { %527 = vmatpush1.msra.mxu0 %v2263_v15  ;;  %1813 = vmatpush3.msra.mxu1 %v2290_v23 }
 0x147   :  { %528 = vmatprep.subr.mxu0 %v2267_v16  ;;  %1814 = vmatprep.subr.mxu1 %v3049_v0 }
 0x148   :  { %529 = vmatpush1.msra.mxu0 %v2273_v18  ;;  %1815 = vmatpush3.msra.mxu1 %v2300_v26 }
 0x149   :  { %530 = vmatprep.subr.mxu0 %v2277_v19  ;;  %1816 = vmatprep.subr.mxu1 %v3049_v0 }
 0x14a   :  { %531 = vmatpush1.msra.mxu0 %v2283_v21  ;;  %1817 = vmatpush3.msra.mxu1 %v2310_v29 }
 0x14b   :  { %532 = vmatprep.subr.mxu0 %v2287_v22  ;;  %1818 = vmatprep.subr.mxu1 %v3049_v0 }
 0x14c   :  { %533 = vmatpush1.msra.mxu0 %v2293_v24  ;;  %1819 = vmatpush3.msra.mxu1 %v2320_v32 }
 0x14d   :  { %534 = vmatprep.subr.mxu0 %v2297_v25  ;;  %1820 = vmatprep.subr.mxu1 %v3049_v0 }
 0x14e   :  { %535 = vmatpush1.msra.mxu0 %v2303_v27  ;;  %1821 = vmatpush3.msra.mxu1 %v2330_v35 }
 0x14f   :  { %536 = vmatprep.subr.mxu0 %v2307_v28  ;;  %1822 = vmatprep.subr.mxu1 %v3049_v0 }
 0x150   :  { %537 = vmatpush1.msra.mxu0 %v2313_v30  ;;  %1823 = vmatpush3.msra.mxu1 %v2340_v38 }
 0x151   :  { %538 = vmatprep.subr.mxu0 %v2317_v31  ;;  %1824 = vmatprep.subr.mxu1 %v3049_v0 }
 0x152   :  { %539 = vmatpush1.msra.mxu0 %v2323_v33  ;;  %1825 = vmatpush3.msra.mxu1 %v2350_v41 }
 0x153   :  { %540 = vmatprep.subr.mxu0 %v2327_v34  ;;  %1826 = vmatprep.subr.mxu1 %v3049_v0 }
 0x154   :  { %541 = vmatpush1.msra.mxu0 %v2333_v36  ;;  %1827 = vmatpush3.msra.mxu1 %v2360_v44 }
 0x155   :  { %542 = vmatprep.subr.mxu0 %v2337_v37  ;;  %1828 = vmatprep.subr.mxu1 %v3049_v0 }
 0x156   :  { %543 = vmatpush1.msra.mxu0 %v2343_v39  ;;  %1829 = vmatpush3.msra.mxu1 %v2373_v47 }
 0x157   :  { %544 = vmatprep.subr.mxu0 %v2347_v40  ;;  %1830 = vmatprep.subr.mxu1 %v3049_v0 }
 0x158   :  { %545 = vmatpush1.msra.mxu0 %v2353_v42  ;;  %1831 = vmatpush3.msra.mxu1 %v2379_v48 }
 0x159   :  { %546 = vmatprep.subr.mxu0 %v3050_v1  ;;  %1832 = vmatprep.subr.mxu1 %v3049_v0 }
 0x15a   :  { %547 = vmatpush1.msra.mxu0 %v3051_v45  ;;  %580 = vmatprep.mubr.f32.mxu0 %v3049_v0 }
 0x15b   :  { %1833 = vmatpush3.msra.mxu1 %v3052_v46  ;;  %1834 = vmatprep.mubr.msk.f32.mxu1 %vm2180_vm0, %v3049_v0 }
 0x15c   :  { %679 = vmatprep.subr.mxu0 %v3053_v49  ;;  %1837 = vmatprep.subr.mxu1 %v3049_v0 }
 0x1fb   :  { %v419_v54 = vpop.f32.mrf.mxu0  ;;  %v490_v58 = vpop.f32.mrf.mxu1 }
 0x1fc   :  { %v494_v60 = vadd.f32 %v419_v54, %v123_v50  ;;  %v507_v46 = vadd.f32 %v490_v58, %v2462_v59  ;;  %v3061_v50 = vld [vmem:[#allocation11_spill] sm:$0xff] }
 0x1fd   :  { %v1801_v61 = vpop.f32.mrf.mxu1  ;;  %v421_v51 = vpop.f32.mrf.mxu0  ;;  %v134_v58 = vld [vmem:[%s133_s26] ss:$8 sm:$0x7]  ;;  %s1595_s26 = smul.u32 24, %s181_s0 }
 0x1fe   :  { %v495_v62 = vmul.f32 0.5, %v494_v60  ;;  %v502_v52 = vadd.f32 %v500_v63, %v421_v51 }
 0x200   :  { %2025 = vtanh.f32 %v495_v62  ;;  %v503_v53 = vmul.f32 0.5, %v502_v52 }
 0x202   :  { %2027 = vtanh.f32 %v503_v53 }
 0x20d   :  { %v2026_v55 = vpop.eup %2025 }
 0x20e   :  { %v497_v56 = vmul.f32 0.5, %v2026_v55 }
 0x20f   :  { %v2028_v48 = vpop.eup %2027 }
 0x210   :  { %v498_v49 = vadd.f32 0.5, %v497_v56  ;;  %v505_v42 = vmul.f32 0.5, %v2028_v48  ;;  %v3056_v48 = vld [vmem:[#allocation13_spill] sm:$0xff]  ;;  %v663_v56 = vrot.slane %v134_v58, 1 }
 0x212   :  { %v508_v45 = vmul.f32 %v507_v46, %v498_v49  ;;  %v506_v61 = vadd.f32 0.5, %v505_v42  ;;  %v3055_v42 = vld [vmem:[#allocation12_spill] sm:$0xff]  ;;  %v3059_v46 = vld [vmem:[#allocation15_spill] sm:$0xff]  ;;  %v3060_v49 = vld [vmem:[#allocation17_spill] sm:$0xff] }
 0x214   :  { %v511_v1 = vadd.f32 %v509_v57, %v508_v45  ;;  %v3058_v45 = vld [vmem:[#allocation14_spill] sm:$0xff] }
 0x216   :  { %2029 = vtanh.f32 %v511_v1  ;;  %v3057_v1 = vld [vmem:[#allocation16_spill] sm:$0xff] }
 0x223   :  { %v2030_v54 = vpop.eup %2029 }
 0x224   :  { %v513_v60 = vsub.f32 %v2466_v43, %v2030_v54  ;;  %v672_v43 = vrot.slane %v134_v58, 2 }
 0x226   :  { %v514_v62 = vmul.f32 %v513_v60, %v506_v61 }
 0x228   :  { %v2539_v40 = vadd.f32 %v2030_v54, %v514_v62 }
 0x22a   :  { %3054 = vst [vmem:[#allocation19_spill] sm:$0xff] %v2539_v40  ;;  %581 = vmatmul.mubr.f32.vlgmr.msra.gmra.mxu0 %v2539_v40  ;;  %1835 = vmatmul.mubr.f32.vlgmr.msra.gmra.mxu1 %v2539_v40 }
 0x22b   :  { %680 = vmatpush1.msra.mxu0 %v2226_v2  ;;  %1838 = vmatpush3.msra.mxu1 %v2248_v10 }
 0x22c   :  { %681 = vmatprep.subr.mxu0 %v2228_v3  ;;  %1839 = vmatprep.subr.mxu1 %v3049_v0 }
 0x22d   :  { %682 = vmatpush1.msra.mxu0 %v2231_v4  ;;  %1840 = vmatpush3.msra.mxu1 %v2254_v12 }
 0x22e   :  { %683 = vmatprep.subr.mxu0 %v2234_v5  ;;  %1841 = vmatprep.subr.mxu1 %v3049_v0 }
 0x22f   :  { %684 = vmatpush1.msra.mxu0 %v2237_v6  ;;  %1842 = vmatpush3.msra.mxu1 %v2260_v14 }
 0x230   :  { %685 = vmatprep.subr.mxu0 %v2240_v7  ;;  %1843 = vmatprep.subr.mxu1 %v3049_v0 }
 0x231   :  { %686 = vmatpush1.msra.mxu0 %v2243_v8  ;;  %1844 = vmatpush3.msra.mxu1 %v2270_v17 }
 0x232   :  { %687 = vmatprep.subr.mxu0 %v2246_v9  ;;  %1845 = vmatprep.subr.mxu1 %v3049_v0 }
 0x233   :  { %688 = vmatpush1.msra.mxu0 %v2251_v11  ;;  %1846 = vmatpush3.msra.mxu1 %v2280_v20 }
 0x234   :  { %689 = vmatprep.subr.mxu0 %v2257_v13  ;;  %1847 = vmatprep.subr.mxu1 %v3049_v0 }
 0x235   :  { %690 = vmatpush1.msra.mxu0 %v2263_v15  ;;  %1848 = vmatpush3.msra.mxu1 %v2290_v23 }
 0x236   :  { %691 = vmatprep.subr.mxu0 %v2267_v16  ;;  %1849 = vmatprep.subr.mxu1 %v3049_v0 }
 0x237   :  { %692 = vmatpush1.msra.mxu0 %v2273_v18  ;;  %1850 = vmatpush3.msra.mxu1 %v2300_v26 }
 0x238   :  { %693 = vmatprep.subr.mxu0 %v2277_v19  ;;  %1851 = vmatprep.subr.mxu1 %v3049_v0 }
 0x239   :  { %694 = vmatpush1.msra.mxu0 %v2283_v21  ;;  %1852 = vmatpush3.msra.mxu1 %v2310_v29 }
 0x23a   :  { %695 = vmatprep.subr.mxu0 %v2287_v22  ;;  %1853 = vmatprep.subr.mxu1 %v3049_v0 }
 0x23b   :  { %696 = vmatpush1.msra.mxu0 %v2293_v24  ;;  %1854 = vmatpush3.msra.mxu1 %v2320_v32 }
 0x23c   :  { %697 = vmatprep.subr.mxu0 %v2297_v25  ;;  %1855 = vmatprep.subr.mxu1 %v3049_v0 }
 0x23d   :  { %698 = vmatpush1.msra.mxu0 %v2303_v27  ;;  %1856 = vmatpush3.msra.mxu1 %v2330_v35 }
 0x23e   :  { %699 = vmatprep.subr.mxu0 %v2307_v28  ;;  %1857 = vmatprep.subr.mxu1 %v3049_v0 }
 0x23f   :  { %700 = vmatpush1.msra.mxu0 %v2313_v30  ;;  %1858 = vmatpush3.msra.mxu1 %v2340_v38 }
 0x240   :  { %701 = vmatprep.subr.mxu0 %v2317_v31  ;;  %1859 = vmatprep.subr.mxu1 %v3049_v0 }
 0x241   :  { %702 = vmatpush1.msra.mxu0 %v2323_v33  ;;  %1860 = vmatpush3.msra.mxu1 %v2350_v41 }
 0x242   :  { %703 = vmatprep.subr.mxu0 %v2327_v34  ;;  %1861 = vmatprep.subr.mxu1 %v3049_v0 }
 0x243   :  { %704 = vmatpush1.msra.mxu0 %v2333_v36  ;;  %1862 = vmatpush3.msra.mxu1 %v2360_v44 }
 0x244   :  { %705 = vmatprep.subr.mxu0 %v2337_v37  ;;  %1863 = vmatprep.subr.mxu1 %v3049_v0 }
 0x245   :  { %706 = vmatpush1.msra.mxu0 %v2343_v39  ;;  %1864 = vmatpush3.msra.mxu1 %v2373_v47 }
 0x246   :  { %707 = vmatprep.subr.mxu0 %v3055_v42  ;;  %1865 = vmatprep.subr.mxu1 %v3049_v0 }
 0x247   :  { %708 = vmatpush1.msra.mxu0 %v3056_v48  ;;  %1866 = vmatpush3.msra.mxu1 %v3057_v1 }
 0x248   :  { %709 = vmatprep.subr.mxu0 %v3058_v45  ;;  %1867 = vmatprep.subr.mxu1 %v3049_v0 }
 0x249   :  { %710 = vmatpush1.msra.mxu0 %v3059_v46  ;;  %743 = vmatprep.mubr.f32.mxu0 %v3049_v0 }
 0x24a   :  { %1868 = vmatpush3.msra.mxu1 %v3060_v49  ;;  %1869 = vmatprep.mubr.msk.f32.mxu1 %vm2180_vm0, %v3049_v0 }
 0x24b   :  { %842 = vmatprep.subr.mxu0 %v3061_v50  ;;  %1872 = vmatprep.subr.mxu1 %v3049_v0 }
 0x2ea   :  { %v582_v63 = vpop.f32.mrf.mxu0  ;;  %v653_v51 = vpop.f32.mrf.mxu1 }
 0x2eb   :  { %v657_v52 = vadd.f32 %v582_v63, %v134_v58  ;;  %v670_v49 = vadd.f32 %v653_v51, %v2462_v59 }
 0x2ec   :  { %v1836_v53 = vpop.f32.mrf.mxu1  ;;  %v584_v57 = vpop.f32.mrf.mxu0 }
 0x2ed   :  { %v658_v55 = vmul.f32 0.5, %v657_v52  ;;  %v665_v54 = vadd.f32 %v663_v56, %v584_v57 }
 0x2ef   :  { %2031 = vtanh.f32 %v658_v55  ;;  %v666_v61 = vmul.f32 0.5, %v665_v54 }
 0x2f1   :  { %2033 = vtanh.f32 %v666_v61 }
 0x2fc   :  { %v2032_v60 = vpop.eup %2031 }
 0x2fd   :  { %v660_v62 = vmul.f32 0.5, %v2032_v60 }
 0x2fe   :  { %v2034_v1 = vpop.eup %2033 }
 0x2ff   :  { %v661_v50 = vadd.f32 0.5, %v660_v62  ;;  %v668_v48 = vmul.f32 0.5, %v2034_v1 }
 0x301   :  { %v671_v46 = vmul.f32 %v670_v49, %v661_v50  ;;  %v669_v53 = vadd.f32 0.5, %v668_v48 }
 0x303   :  { %v674_v45 = vadd.f32 %v672_v43, %v671_v46 }
 0x305   :  { %2035 = vtanh.f32 %v674_v45 }
 0x312   :  { %v2036_v63 = vpop.eup %2035 }
 0x313   :  { %v676_v52 = vsub.f32 %v2539_v40, %v2036_v63 }
 0x315   :  { %v677_v55 = vmul.f32 %v676_v52, %v669_v53  ;;  %v2689_v52 = vld [vmem:[#allocation6 + $0x168] sm:$0xff] }
 0x317   :  { %v2612_v42 = vadd.f32 %v2036_v63, %v677_v55  ;;  %v2693_v55 = vld [vmem:[#allocation6 + $0x158] sm:$0xff] }
 0x319   :  { %3062 = vst [vmem:[#allocation20_spill] sm:$0xff] %v2612_v42  ;;  %744 = vmatmul.mubr.f32.vlgmr.msra.gmra.mxu0 %v2612_v42  ;;  %1870 = vmatmul.mubr.f32.vlgmr.msra.gmra.mxu1 %v2612_v42 }
 0x31a   :  { %843 = vmatpush1.msra.mxu0 %v2226_v2  ;;  %1873 = vmatpush3.msra.mxu1 %v2248_v10  ;;  %v3063_v2 = vld [vmem:[#allocation12_spill] sm:$0xff] }
 0x31b   :  { %844 = vmatprep.subr.mxu0 %v2228_v3  ;;  %1874 = vmatprep.subr.mxu1 %v3049_v0  ;;  %v3064_v3 = vld [vmem:[#allocation13_spill] sm:$0xff] }
 0x31c   :  { %845 = vmatpush1.msra.mxu0 %v2231_v4  ;;  %1875 = vmatpush3.msra.mxu1 %v2254_v12  ;;  %v3065_v4 = vld [vmem:[#allocation16_spill] sm:$0xff] }
 0x31d   :  { %846 = vmatprep.subr.mxu0 %v2234_v5  ;;  %1876 = vmatprep.subr.mxu1 %v3049_v0  ;;  %v3066_v5 = vld [vmem:[#allocation14_spill] sm:$0xff] }
 0x31e   :  { %847 = vmatpush1.msra.mxu0 %v2237_v6  ;;  %1877 = vmatpush3.msra.mxu1 %v2260_v14  ;;  %v3067_v6 = vld [vmem:[#allocation15_spill] sm:$0xff] }
 0x31f   :  { %848 = vmatprep.subr.mxu0 %v2240_v7  ;;  %1878 = vmatprep.subr.mxu1 %v3049_v0  ;;  %v3068_v7 = vld [vmem:[#allocation17_spill] sm:$0xff] }
 0x320   :  { %849 = vmatpush1.msra.mxu0 %v2243_v8  ;;  %1879 = vmatpush3.msra.mxu1 %v2270_v17  ;;  %v3069_v8 = vld [vmem:[#allocation11_spill] sm:$0xff] }
 0x321   :  { %850 = vmatprep.subr.mxu0 %v2246_v9  ;;  %1880 = vmatprep.subr.mxu1 %v3049_v0  ;;  %v145_v9 = vld [vmem:[%s144_s7] ss:$8 sm:$0x7] }
 0x322   :  { %851 = vmatpush1.msra.mxu0 %v2251_v11  ;;  %1881 = vmatpush3.msra.mxu1 %v2280_v20  ;;  %v835_v49 = vrot.slane %v145_v9, 2 }
 0x323   :  { %852 = vmatprep.subr.mxu0 %v2257_v13  ;;  %1882 = vmatprep.subr.mxu1 %v3049_v0 }
 0x324   :  { %853 = vmatpush1.msra.mxu0 %v2263_v15  ;;  %1883 = vmatpush3.msra.mxu1 %v2290_v23 }
 0x325   :  { %854 = vmatprep.subr.mxu0 %v2267_v16  ;;  %1884 = vmatprep.subr.mxu1 %v3049_v0 }
 0x326   :  { %855 = vmatpush1.msra.mxu0 %v2273_v18  ;;  %1885 = vmatpush3.msra.mxu1 %v2300_v26 }
 0x327   :  { %856 = vmatprep.subr.mxu0 %v2277_v19  ;;  %1886 = vmatprep.subr.mxu1 %v3049_v0  ;;  %v826_v19 = vrot.slane %v145_v9, 1 }
 0x328   :  { %857 = vmatpush1.msra.mxu0 %v2283_v21  ;;  %1887 = vmatpush3.msra.mxu1 %v2310_v29 }
 0x329   :  { %858 = vmatprep.subr.mxu0 %v2287_v22  ;;  %1888 = vmatprep.subr.mxu1 %v3049_v0 }
 0x32a   :  { %859 = vmatpush1.msra.mxu0 %v2293_v24  ;;  %1889 = vmatpush3.msra.mxu1 %v2320_v32 }
 0x32b   :  { %860 = vmatprep.subr.mxu0 %v2297_v25  ;;  %1890 = vmatprep.subr.mxu1 %v3049_v0 }
 0x32c   :  { %861 = vmatpush1.msra.mxu0 %v2303_v27  ;;  %1891 = vmatpush3.msra.mxu1 %v2330_v35 }
 0x32d   :  { %862 = vmatprep.subr.mxu0 %v2307_v28  ;;  %1892 = vmatprep.subr.mxu1 %v3049_v0 }
 0x32e   :  { %863 = vmatpush1.msra.mxu0 %v2313_v30  ;;  %1893 = vmatpush3.msra.mxu1 %v2340_v38 }
 0x32f   :  { %864 = vmatprep.subr.mxu0 %v2317_v31  ;;  %1894 = vmatprep.subr.mxu1 %v3049_v0 }
 0x330   :  { %865 = vmatpush1.msra.mxu0 %v2323_v33  ;;  %1895 = vmatpush3.msra.mxu1 %v2350_v41 }
 0x331   :  { %866 = vmatprep.subr.mxu0 %v2327_v34  ;;  %1896 = vmatprep.subr.mxu1 %v3049_v0 }
 0x332   :  { %867 = vmatpush1.msra.mxu0 %v2333_v36  ;;  %1897 = vmatpush3.msra.mxu1 %v2360_v44 }
 0x333   :  { %868 = vmatprep.subr.mxu0 %v2337_v37  ;;  %1898 = vmatprep.subr.mxu1 %v3049_v0 }
 0x334   :  { %869 = vmatpush1.msra.mxu0 %v2343_v39  ;;  %1899 = vmatpush3.msra.mxu1 %v2373_v47 }
 0x335   :  { %870 = vmatprep.subr.mxu0 %v3063_v2  ;;  %1900 = vmatprep.subr.mxu1 %v3049_v0 }
 0x336   :  { %871 = vmatpush1.msra.mxu0 %v3064_v3  ;;  %1901 = vmatpush3.msra.mxu1 %v3065_v4 }
 0x337   :  { %872 = vmatprep.subr.mxu0 %v3066_v5  ;;  %1902 = vmatprep.subr.mxu1 %v3049_v0 }
 0x338   :  { %873 = vmatpush1.msra.mxu0 %v3067_v6  ;;  %906 = vmatprep.mubr.f32.mxu0 %v3049_v0 }
 0x339   :  { %1903 = vmatpush3.msra.mxu1 %v3068_v7  ;;  %1904 = vmatprep.mubr.msk.f32.mxu1 %vm2180_vm0, %v3049_v0 }
 0x33a   :  { %1005 = vmatprep.subr.mxu0 %v3069_v8  ;;  %1907 = vmatprep.subr.mxu1 %v3049_v0  ;;  %v2697_v8 = vld [vmem:[#allocation6 + $0x150] sm:$0xff] }
 0x3d9   :  { %v745_v11 = vpop.f32.mrf.mxu0  ;;  %v816_v13 = vpop.f32.mrf.mxu1 }
 0x3da   :  { %v820_v15 = vadd.f32 %v745_v11, %v145_v9  ;;  %v833_v58 = vadd.f32 %v816_v13, %v2462_v59  ;;  %v2701_v9 = vld [vmem:[#allocation6 + $0x140] sm:$0xff]  ;;  %v2705_v11 = vld [vmem:[#allocation6 + $0x138] sm:$0xff] }
 0x3db   :  { %v1871_v16 = vpop.f32.mrf.mxu1  ;;  %v747_v43 = vpop.f32.mrf.mxu0  ;;  %v2713_v13 = vld [vmem:[#allocation6 + $0x120] sm:$0xff] }
 0x3dc   :  { %v821_v18 = vmul.f32 0.5, %v820_v15  ;;  %v828_v48 = vadd.f32 %v826_v19, %v747_v43  ;;  %v2721_v15 = vld [vmem:[#allocation6 + $0x108] sm:$0xff]  ;;  %v2729_v16 = vld [vmem:[#allocation6 + $0xf0] sm:$0xff]  ;;  %v2817_v43 = vld [vmem:[#allocation6 + $0x118] sm:$0xff] }
 0x3dd   :  { %v2811_v19 = vld [vmem:[#allocation6 + $0x130] sm:$0xff] }
 0x3de   :  { %2037 = vtanh.f32 %v821_v18  ;;  %v829_v1 = vmul.f32 0.5, %v828_v48  ;;  %v2737_v18 = vld [vmem:[#allocation6 + $0xd8] sm:$0xff]  ;;  %v2823_v48 = vld [vmem:[#allocation6 + $0x100] sm:$0xff] }
 0x3e0   :  { %2039 = vtanh.f32 %v829_v1  ;;  %v2829_v1 = vld [vmem:[#allocation6 + $0xe8] sm:$0xff] }
 0x3eb   :  { %v2038_v45 = vpop.eup %2037 }
 0x3ec   :  { %v823_v46 = vmul.f32 0.5, %v2038_v45  ;;  %v2834_v45 = vld [vmem:[#allocation6 + $0xc0] sm:$0xff] }
 0x3ed   :  { %v2040_v57 = vpop.eup %2039 }
 0x3ee   :  { %v824_v50 = vadd.f32 0.5, %v823_v46  ;;  %v831_v54 = vmul.f32 0.5, %v2040_v57  ;;  %v2837_v46 = vld [vmem:[#allocation6 + $0xd0] sm:$0xff]  ;;  %v2857_v57 = vld [vmem:[#allocation6 + $0xa0] sm:$0xff] }
 0x3f0   :  { %v834_v51 = vmul.f32 %v833_v58, %v824_v50  ;;  %v832_v60 = vadd.f32 0.5, %v831_v54  ;;  %v2844_v50 = vld [vmem:[#allocation6 + $0xa8] sm:$0xff]  ;;  %v2847_v58 = vld [vmem:[#allocation6 + $0xb8] sm:$0xff]  ;;  %v2860_v54 = vld [vmem:[#allocation6 + $0x80] sm:$0xff] }
 0x3f2   :  { %v837_v56 = vadd.f32 %v835_v49, %v834_v51  ;;  %v2840_v49 = vld [vmem:[#allocation6 + $0xb0] sm:$0xff]  ;;  %v2850_v51 = vld [vmem:[#allocation6 + $0x98] sm:$0xff] }
 0x3f4   :  { %2041 = vtanh.f32 %v837_v56  ;;  %v2854_v56 = vld [vmem:[#allocation6 + $0x90] sm:$0xff] }
 0x401   :  { %v2042_v61 = vpop.eup %2041 }
 0x402   :  { %v839_v62 = vsub.f32 %v2612_v42, %v2042_v61 }
 0x404   :  { %v840_v63 = vmul.f32 %v839_v62, %v832_v60  ;;  %v2867_v60 = vld [vmem:[#allocation6 + $0x88] sm:$0xff] }
 0x405   :  { %v2870_v62 = vld [vmem:[#allocation6 + $0x68] sm:$0xff] }
 0x406   :  { %v2685_v53 = vadd.f32 %v2042_v61, %v840_v63  ;;  %v2864_v61 = vld [vmem:[#allocation6 + $0x78] sm:$0xff]  ;;  %v2874_v63 = vld [vmem:[#allocation6 + $0x60] sm:$0xff] }
 0x408   :  { %3070 = vst [vmem:[#allocation12_spill] sm:$0xff] %v2685_v53  ;;  %907 = vmatmul.mubr.f32.vlgmr.msra.gmra.mxu0 %v2685_v53  ;;  %1905 = vmatmul.mubr.f32.vlgmr.msra.gmra.mxu1 %v2685_v53 }
 0x409   :  { %1006 = vmatpush1.msra.mxu0 %v2689_v52  ;;  %1908 = vmatpush3.msra.mxu1 %v2248_v10  ;;  %v2709_v10 = vld [vmem:[#allocation6 + $0x128] sm:$0xff] }
 0x40a   :  { %1007 = vmatprep.subr.mxu0 %v2693_v55  ;;  %1909 = vmatprep.subr.mxu1 %v3049_v0 }
 0x40b   :  { %1008 = vmatpush1.msra.mxu0 %v2697_v8  ;;  %1910 = vmatpush3.msra.mxu1 %v2254_v12  ;;  %v2717_v12 = vld [vmem:[#allocation6 + $0x110] sm:$0xff] }
 0x40c   :  { %1009 = vmatprep.subr.mxu0 %v2701_v9  ;;  %1911 = vmatprep.subr.mxu1 %v3049_v0 }
 0x40d   :  { %1010 = vmatpush1.msra.mxu0 %v2705_v11  ;;  %1912 = vmatpush3.msra.mxu1 %v2260_v14  ;;  %v2725_v14 = vld [vmem:[#allocation6 + $0xf8] sm:$0xff] }
 0x40e   :  { %1011 = vmatprep.subr.mxu0 %v2709_v10  ;;  %1913 = vmatprep.subr.mxu1 %v3049_v0 }
 0x40f   :  { %1012 = vmatpush1.msra.mxu0 %v2713_v13  ;;  %1914 = vmatpush3.msra.mxu1 %v2270_v17  ;;  %v2733_v17 = vld [vmem:[#allocation6 + $0xe0] sm:$0xff] }
 0x410   :  { %1013 = vmatprep.subr.mxu0 %v2717_v12  ;;  %1915 = vmatprep.subr.mxu1 %v3049_v0 }
 0x411   :  { %1014 = vmatpush1.msra.mxu0 %v2721_v15  ;;  %1916 = vmatpush3.msra.mxu1 %v2280_v20  ;;  %v2741_v20 = vld [vmem:[#allocation6 + $0xc8] sm:$0xff] }
 0x412   :  { %1015 = vmatprep.subr.mxu0 %v2725_v14  ;;  %1917 = vmatprep.subr.mxu1 %v3049_v0 }
 0x413   :  { %1016 = vmatpush1.msra.mxu0 %v2729_v16  ;;  %1918 = vmatpush3.msra.mxu1 %v2290_v23 }
 0x414   :  { %1017 = vmatprep.subr.mxu0 %v2733_v17  ;;  %1919 = vmatprep.subr.mxu1 %v3049_v0 }
 0x415   :  { %1018 = vmatpush1.msra.mxu0 %v2737_v18  ;;  %1920 = vmatpush3.msra.mxu1 %v2300_v26 }
 0x416   :  { %1019 = vmatprep.subr.mxu0 %v2741_v20  ;;  %1921 = vmatprep.subr.mxu1 %v3049_v0 }
 0x417   :  { %1020 = vmatpush1.msra.mxu0 %v2283_v21  ;;  %1922 = vmatpush3.msra.mxu1 %v2310_v29  ;;  %v2782_v21 = vld [vmem:[#allocation6 + $0x170] sm:$0xff] }
 0x418   :  { %1021 = vmatprep.subr.mxu0 %v2287_v22  ;;  %1923 = vmatprep.subr.mxu1 %v3049_v0  ;;  %v156_v22 = vld [vmem:[%s155_s10] ss:$8 sm:$0x7] }
 0x419   :  { %1022 = vmatpush1.msra.mxu0 %v2293_v24  ;;  %1924 = vmatpush3.msra.mxu1 %v2320_v32 }
 0x41a   :  { %1023 = vmatprep.subr.mxu0 %v2297_v25  ;;  %1925 = vmatprep.subr.mxu1 %v3049_v0 }
 0x41b   :  { %1024 = vmatpush1.msra.mxu0 %v2303_v27  ;;  %1926 = vmatpush3.msra.mxu1 %v2330_v35 }
 0x41c   :  { %1025 = vmatprep.subr.mxu0 %v2307_v28  ;;  %1927 = vmatprep.subr.mxu1 %v3049_v0  ;;  %v989_v28 = vrot.slane %v156_v22, 1 }
 0x41d   :  { %1026 = vmatpush1.msra.mxu0 %v2313_v30  ;;  %1928 = vmatpush3.msra.mxu1 %v2340_v38 }
 0x41e   :  { %1027 = vmatprep.subr.mxu0 %v2317_v31  ;;  %1929 = vmatprep.subr.mxu1 %v3049_v0 }
 0x41f   :  { %1028 = vmatpush1.msra.mxu0 %v2323_v33  ;;  %1930 = vmatpush3.msra.mxu1 %v2350_v41 }
 0x420   :  { %1029 = vmatprep.subr.mxu0 %v2327_v34  ;;  %1931 = vmatprep.subr.mxu1 %v3049_v0  ;;  %v998_v34 = vrot.slane %v156_v22, 2 }
 0x421   :  { %1030 = vmatpush1.msra.mxu0 %v2333_v36  ;;  %1932 = vmatpush3.msra.mxu1 %v2360_v44 }
 0x422   :  { %1031 = vmatprep.subr.mxu0 %v2337_v37  ;;  %1933 = vmatprep.subr.mxu1 %v3049_v0 }
 0x423   :  { %1032 = vmatpush1.msra.mxu0 %v2343_v39  ;;  %1934 = vmatpush3.msra.mxu1 %v2373_v47 }
 0x424   :  { %1033 = vmatprep.subr.mxu0 %v3063_v2  ;;  %1935 = vmatprep.subr.mxu1 %v3049_v0 }
 0x425   :  { %1034 = vmatpush1.msra.mxu0 %v3064_v3  ;;  %1936 = vmatpush3.msra.mxu1 %v3065_v4 }
 0x426   :  { %1035 = vmatprep.subr.mxu0 %v3066_v5  ;;  %1937 = vmatprep.subr.mxu1 %v3049_v0  ;;  %v2793_v5 = vld [vmem:[#allocation6 + $0x178] sm:$0xff] }
 0x427   :  { %1036 = vmatpush1.msra.mxu0 %v3067_v6  ;;  %1069 = vmatprep.mubr.f32.mxu0 %v3049_v0  ;;  %v2799_v6 = vld [vmem:[#allocation6 + $0x160] sm:$0xff] }
 0x428   :  { %1938 = vmatpush3.msra.mxu1 %v3068_v7  ;;  %1939 = vmatprep.mubr.msk.f32.mxu1 %vm2180_vm0, %v3049_v0  ;;  %v2805_v7 = vld [vmem:[#allocation6 + $0x148] sm:$0xff] }
 0x429   :  { %1168 = vmatprep.subr.mxu0 %v2782_v21  ;;  %1942 = vmatprep.subr.mxu1 %v3049_v0 }
 0x4c8   :  { %v908_v23 = vpop.f32.mrf.mxu0  ;;  %v979_v24 = vpop.f32.mrf.mxu1 }
 0x4c9   :  { %v983_v25 = vadd.f32 %v908_v23, %v156_v22  ;;  %v996_v36 = vadd.f32 %v979_v24, %v2462_v59  ;;  %v2877_v22 = vld [vmem:[#allocation6 + $0x70] sm:$0xff]  ;;  %v2884_v24 = vld [vmem:[#allocation6 + $0x48] sm:$0xff] }
 0x4ca   :  { %v1906_v26 = vpop.f32.mrf.mxu1  ;;  %v910_v29 = vpop.f32.mrf.mxu0  ;;  %v2880_v23 = vld [vmem:[#allocation6 + $0x50] sm:$0xff] }
 0x4cb   :  { %v984_v27 = vmul.f32 0.5, %v983_v25  ;;  %v991_v30 = vadd.f32 %v989_v28, %v910_v29  ;;  %v2887_v25 = vld [vmem:[#allocation6 + $0x58] sm:$0xff]  ;;  %v2897_v28 = vld [vmem:[#allocation6 + $0x40] sm:$0xff] }
 0x4cc   :  { %v2890_v26 = vld [vmem:[#allocation6 + $0x38] sm:$0xff]  ;;  %v2900_v29 = vld [vmem:[#allocation6 + $0x20] sm:$0xff] }
 0x4cd   :  { %2043 = vtanh.f32 %v984_v27  ;;  %v992_v31 = vmul.f32 0.5, %v991_v30  ;;  %v2894_v27 = vld [vmem:[#allocation6 + $0x30] sm:$0xff]  ;;  %3071 = vst [vmem:[#allocation13_spill] sm:$0xff] %v2900_v29  ;;  %v2904_v30 = vld [vmem:[#allocation6 + $0x18] sm:$0xff] }
 0x4ce   :  { %3072 = vst [vmem:[#allocation16_spill] sm:$0xff] %v2904_v30 }
 0x4cf   :  { %2045 = vtanh.f32 %v992_v31  ;;  %v2907_v31 = vld [vmem:[#allocation6 + $0x28] sm:$0xff] }
 0x4d0   :  { %3073 = vst [vmem:[#allocation14_spill] sm:$0xff] %v2907_v31 }
 0x4da   :  { %v2044_v32 = vpop.eup %2043 }
 0x4db   :  { %v986_v33 = vmul.f32 0.5, %v2044_v32  ;;  %v2910_v32 = vld [vmem:[#allocation6 + $0x8] sm:$0xff] }
 0x4dc   :  { %v2046_v39 = vpop.eup %2045  ;;  %3074 = vst [vmem:[#allocation15_spill] sm:$0xff] %v2910_v32 }
 0x4dd   :  { %v987_v35 = vadd.f32 0.5, %v986_v33  ;;  %v994_v41 = vmul.f32 0.5, %v2046_v39  ;;  %v2914_v33 = vld [vmem:[#allocation6] sm:$0xff] }
 0x4de   :  { %3075 = vst [vmem:[#allocation17_spill] sm:$0xff] %v2914_v33 }
 0x4df   :  { %v997_v37 = vmul.f32 %v996_v36, %v987_v35  ;;  %v995_v47 = vadd.f32 0.5, %v994_v41  ;;  %v167_v35 = vld [vmem:[%s166_s16] ss:$8 sm:$0x7] }
 0x4e0   :  { %v1161_v42 = vrot.slane %v167_v35, 2 }
 0x4e1   :  { %v1000_v38 = vadd.f32 %v998_v34, %v997_v37  ;;  %v2918_v34 = vld [vmem:[#allocation6 + $0x10] sm:$0xff] }
 0x4e2   :  { %3076 = vst [vmem:[#allocation11_spill] sm:$0xff] %v2918_v34 }
 0x4e3   :  { %2047 = vtanh.f32 %v1000_v38 }
 0x4f0   :  { %v2048_v44 = vpop.eup %2047 }
 0x4f1   :  { %v1002_v2 = vsub.f32 %v2685_v53, %v2048_v44 }
 0x4f3   :  { %v1003_v3 = vmul.f32 %v1002_v2, %v995_v47 }
 0x4f5   :  { %v2788_v4 = vadd.f32 %v2048_v44, %v1003_v3  ;;  %v1152_v44 = vrot.slane %v167_v35, 1 }
 0x4f7   :  { %1070 = vmatmul.mubr.f32.vlgmr.msra.gmra.mxu0 %v2788_v4  ;;  %1940 = vmatmul.mubr.f32.vlgmr.msra.gmra.mxu1 %v2788_v4 }
 0x4f8   :  { %1169 = vmatpush1.msra.mxu0 %v2689_v52  ;;  %1943 = vmatpush3.msra.mxu1 %v2793_v5 }
 0x4f9   :  { %1170 = vmatprep.subr.mxu0 %v2693_v55  ;;  %1944 = vmatprep.subr.mxu1 %v3049_v0 }
 0x4fa   :  { %1171 = vmatpush1.msra.mxu0 %v2697_v8  ;;  %1945 = vmatpush3.msra.mxu1 %v2799_v6 }
 0x4fb   :  { %1172 = vmatprep.subr.mxu0 %v2701_v9  ;;  %1946 = vmatprep.subr.mxu1 %v3049_v0 }
 0x4fc   :  { %1173 = vmatpush1.msra.mxu0 %v2705_v11  ;;  %1947 = vmatpush3.msra.mxu1 %v2805_v7 }
 0x4fd   :  { %1174 = vmatprep.subr.mxu0 %v2709_v10  ;;  %1948 = vmatprep.subr.mxu1 %v3049_v0 }
 0x4fe   :  { %1175 = vmatpush1.msra.mxu0 %v2713_v13  ;;  %1949 = vmatpush3.msra.mxu1 %v2811_v19 }
 0x4ff   :  { %1176 = vmatprep.subr.mxu0 %v2717_v12  ;;  %1950 = vmatprep.subr.mxu1 %v3049_v0 }
 0x500   :  { %1177 = vmatpush1.msra.mxu0 %v2721_v15  ;;  %1951 = vmatpush3.msra.mxu1 %v2817_v43 }
 0x501   :  { %1178 = vmatprep.subr.mxu0 %v2725_v14  ;;  %1952 = vmatprep.subr.mxu1 %v3049_v0 }
 0x502   :  { %1179 = vmatpush1.msra.mxu0 %v2729_v16  ;;  %1953 = vmatpush3.msra.mxu1 %v2823_v48 }
 0x503   :  { %1180 = vmatprep.subr.mxu0 %v2733_v17  ;;  %1954 = vmatprep.subr.mxu1 %v3049_v0 }
 0x504   :  { %1181 = vmatpush1.msra.mxu0 %v2737_v18  ;;  %1955 = vmatpush3.msra.mxu1 %v2829_v1 }
 0x505   :  { %1182 = vmatprep.subr.mxu0 %v2741_v20  ;;  %1956 = vmatprep.subr.mxu1 %v3049_v0 }
 0x506   :  { %1183 = vmatpush1.msra.mxu0 %v2834_v45  ;;  %1957 = vmatpush3.msra.mxu1 %v2837_v46 }
 0x507   :  { %1184 = vmatprep.subr.mxu0 %v2840_v49  ;;  %1958 = vmatprep.subr.mxu1 %v3049_v0 }
 0x508   :  { %1185 = vmatpush1.msra.mxu0 %v2844_v50  ;;  %1959 = vmatpush3.msra.mxu1 %v2847_v58 }
 0x509   :  { %1186 = vmatprep.subr.mxu0 %v2850_v51  ;;  %1960 = vmatprep.subr.mxu1 %v3049_v0 }
 0x50a   :  { %1187 = vmatpush1.msra.mxu0 %v2854_v56  ;;  %1961 = vmatpush3.msra.mxu1 %v2857_v57 }
 0x50b   :  { %1188 = vmatprep.subr.mxu0 %v2860_v54  ;;  %1962 = vmatprep.subr.mxu1 %v3049_v0 }
 0x50c   :  { %1189 = vmatpush1.msra.mxu0 %v2864_v61  ;;  %1963 = vmatpush3.msra.mxu1 %v2867_v60 }
 0x50d   :  { %1190 = vmatprep.subr.mxu0 %v2870_v62  ;;  %1964 = vmatprep.subr.mxu1 %v3049_v0 }
 0x50e   :  { %1191 = vmatpush1.msra.mxu0 %v2874_v63  ;;  %1965 = vmatpush3.msra.mxu1 %v2877_v22 }
 0x50f   :  { %1192 = vmatprep.subr.mxu0 %v2880_v23  ;;  %1966 = vmatprep.subr.mxu1 %v3049_v0 }
 0x510   :  { %1193 = vmatpush1.msra.mxu0 %v2884_v24  ;;  %1967 = vmatpush3.msra.mxu1 %v2887_v25 }
 0x511   :  { %1194 = vmatprep.subr.mxu0 %v2890_v26  ;;  %1968 = vmatprep.subr.mxu1 %v3049_v0 }
 0x512   :  { %1195 = vmatpush1.msra.mxu0 %v2894_v27  ;;  %1969 = vmatpush3.msra.mxu1 %v2897_v28 }
 0x513   :  { %1196 = vmatprep.subr.mxu0 %v2900_v29  ;;  %1970 = vmatprep.subr.mxu1 %v3049_v0 }
 0x514   :  { %1197 = vmatpush1.msra.mxu0 %v2904_v30  ;;  %1971 = vmatpush3.msra.mxu1 %v2907_v31 }
 0x515   :  { %1198 = vmatprep.subr.mxu0 %v2910_v32  ;;  %1972 = vmatprep.subr.mxu1 %v3049_v0 }
 0x516   :  { %1199 = vmatpush1.msra.mxu0 %v2914_v33  ;;  %1232 = vmatprep.mubr.f32.mxu0 %v3049_v0 }
 0x517   :  { %1973 = vmatpush3.msra.mxu1 %v2918_v34  ;;  %1974 = vmatprep.mubr.msk.f32.mxu1 %vm2180_vm0, %v3049_v0 }
 0x518   :  { %1331 = vmatprep.subr.mxu0 %v2782_v21  ;;  %1977 = vmatprep.subr.mxu1 %v3049_v0 }
 0x5b7   :  { %v1071_v36 = vpop.f32.mrf.mxu0  ;;  %v1142_v37 = vpop.f32.mrf.mxu1 }
 0x5b8   :  { %v1146_v38 = vadd.f32 %v1071_v36, %v167_v35  ;;  %v1159_v34 = vadd.f32 %v1142_v37, %v2462_v59  ;;  %v3078_v59 = vld [vmem:[#allocation16_spill] sm:$0xff] }
 0x5b9   :  { %v1941_v39 = vpop.f32.mrf.mxu1  ;;  %v1073_v47 = vpop.f32.mrf.mxu0 }
 0x5ba   :  { %v1147_v41 = vmul.f32 0.5, %v1146_v38  ;;  %v1154_v2 = vadd.f32 %v1152_v44, %v1073_v47  ;;  %v3083_v44 = vld [vmem:[#allocation19_spill] sm:$0xff] }
 0x5bc   :  { %2049 = vtanh.f32 %v1147_v41  ;;  %v1155_v3 = vmul.f32 0.5, %v1154_v2 }
 0x5be   :  { %2051 = vtanh.f32 %v1155_v3  ;;  %v3084_v3 = vld [vmem:[#allocation20_spill] sm:$0xff] }
 0x5c9   :  { %v2050_v21 = vpop.eup %2049 }
 0x5ca   :  { %v1149_v53 = vmul.f32 0.5, %v2050_v21 }
 0x5cb   :  { %v2052_v31 = vpop.eup %2051 }
 0x5cc   :  { %v1150_v40 = vadd.f32 0.5, %v1149_v53  ;;  %v1157_v30 = vmul.f32 0.5, %v2052_v31  ;;  %v3080_v53 = vld [vmem:[#allocation15_spill] sm:$0xff] }
 0x5ce   :  { %v1160_v33 = vmul.f32 %v1159_v34, %v1150_v40  ;;  %v1158_v39 = vadd.f32 0.5, %v1157_v30  ;;  %v3077_v40 = vld [vmem:[#allocation13_spill] sm:$0xff] }
 0x5d0   :  { %v1163_v32 = vadd.f32 %v1161_v42, %v1160_v33  ;;  %v3079_v42 = vld [vmem:[#allocation14_spill] sm:$0xff] }
 0x5d2   :  { %2053 = vtanh.f32 %v1163_v32  ;;  %v1495_v32 = vlaneseq }
 0x5d4   :  { %v1496_v33 = vshrl.u32 %v1495_v32, 7 }
 0x5d6   :  { %v1497_v35 = vsub.s32 0, %v1496_v33 }
 0x5d8   :  { %v1498_v47 = vrot.slane %v3083_v44, %v1497_v35  ;;  %v1504_v21 = vrot.slane %v3084_v3, %v1497_v35 }
 0x5df   :  { %v2054_v36 = vpop.eup %2053 }
 0x5e0   :  { %v1165_v38 = vsub.f32 %v2788_v4, %v2054_v36 }
 0x5e2   :  { %v1166_v41 = vmul.f32 %v1165_v38, %v1158_v39 }
 0x5e4   :  { %v2927_v29 = vadd.f32 %v2054_v36, %v1166_v41  ;;  %v3085_v36 = vld [vmem:[#allocation12_spill] sm:$0xff] }
 0x5e5   :  { %v1510_v39 = vrot.slane %v3085_v36, %v1497_v35 }
 0x5e6   :  { %1233 = vmatmul.mubr.f32.vlgmr.msra.gmra.mxu0 %v2927_v29  ;;  %1975 = vmatmul.mubr.f32.vlgmr.msra.gmra.mxu1 %v2927_v29 }
 0x5e7   :  { %1332 = vmatpush1.msra.mxu0 %v2689_v52  ;;  %1978 = vmatpush3.msra.mxu1 %v2793_v5  ;;  %v3081_v52 = vld [vmem:[#allocation17_spill] sm:$0xff] }
 0x5e8   :  { %1333 = vmatprep.subr.mxu0 %v2693_v55  ;;  %1979 = vmatprep.subr.mxu1 %v3049_v0  ;;  %v3082_v55 = vld [vmem:[#allocation11_spill] sm:$0xff] }
 0x5e9   :  { %1334 = vmatpush1.msra.mxu0 %v2697_v8  ;;  %1980 = vmatpush3.msra.mxu1 %v2799_v6  ;;  %v178_v8 = vld [vmem:[%s177_s22] ss:$8 sm:$0x7] }
 0x5ea   :  { %1335 = vmatprep.subr.mxu0 %v2701_v9  ;;  %1981 = vmatprep.subr.mxu1 %v3049_v0  ;;  %v2115_v6 = vld [vmem:[%s3012_s3] sm:$0x1]  ;;  %s187_s3 = sadd.s32 %s1595_s26, %s184_s27 }
 0x5eb   :  { %1336 = vmatpush1.msra.mxu0 %v2705_v11  ;;  %1982 = vmatpush3.msra.mxu1 %v2805_v7  ;;  %s188_s28 = scalar_lea.vmem [#allocation4], %s187_s3 }
 0x5ec   :  { %1337 = vmatprep.subr.mxu0 %v2709_v10  ;;  %1983 = vmatprep.subr.mxu1 %v3049_v0 }
 0x5ed   :  { %1338 = vmatpush1.msra.mxu0 %v2713_v13  ;;  %1984 = vmatpush3.msra.mxu1 %v2811_v19 }
 0x5ee   :  { %1339 = vmatprep.subr.mxu0 %v2717_v12  ;;  %1985 = vmatprep.subr.mxu1 %v3049_v0 }
 0x5ef   :  { %1340 = vmatpush1.msra.mxu0 %v2721_v15  ;;  %1986 = vmatpush3.msra.mxu1 %v2817_v43  ;;  %v1315_v15 = vrot.slane %v178_v8, 1 }
 0x5f0   :  { %1341 = vmatprep.subr.mxu0 %v2725_v14  ;;  %1987 = vmatprep.subr.mxu1 %v3049_v0 }
 0x5f1   :  { %1342 = vmatpush1.msra.mxu0 %v2729_v16  ;;  %1988 = vmatpush3.msra.mxu1 %v2823_v48 }
 0x5f2   :  { %1343 = vmatprep.subr.mxu0 %v2733_v17  ;;  %1989 = vmatprep.subr.mxu1 %v3049_v0 }
 0x5f3   :  { %1344 = vmatpush1.msra.mxu0 %v2737_v18  ;;  %1990 = vmatpush3.msra.mxu1 %v2829_v1 }
 0x5f4   :  { %1345 = vmatprep.subr.mxu0 %v2741_v20  ;;  %1991 = vmatprep.subr.mxu1 %v3049_v0 }
 0x5f5   :  { %1346 = vmatpush1.msra.mxu0 %v2834_v45  ;;  %1992 = vmatpush3.msra.mxu1 %v2837_v46 }
 0x5f6   :  { %1347 = vmatprep.subr.mxu0 %v2840_v49  ;;  %1993 = vmatprep.subr.mxu1 %v3049_v0 }
 0x5f7   :  { %1348 = vmatpush1.msra.mxu0 %v2844_v50  ;;  %1994 = vmatpush3.msra.mxu1 %v2847_v58 }
 0x5f8   :  { %1349 = vmatprep.subr.mxu0 %v2850_v51  ;;  %1995 = vmatprep.subr.mxu1 %v3049_v0  ;;  %v189_v51 = vld [vmem:[%s188_s28] ss:$8 sm:$0x7] }
 0x5f9   :  { %1350 = vmatpush1.msra.mxu0 %v2854_v56  ;;  %1996 = vmatpush3.msra.mxu1 %v2857_v57 }
 0x5fa   :  { %1351 = vmatprep.subr.mxu0 %v2860_v54  ;;  %1997 = vmatprep.subr.mxu1 %v3049_v0 }
 0x5fb   :  { %1352 = vmatpush1.msra.mxu0 %v2864_v61  ;;  %1998 = vmatpush3.msra.mxu1 %v2867_v60 }
 0x5fc   :  { %1353 = vmatprep.subr.mxu0 %v2870_v62  ;;  %1999 = vmatprep.subr.mxu1 %v3049_v0  ;;  %v1478_v62 = vrot.slane %v189_v51, 1 }
 0x5fd   :  { %1354 = vmatpush1.msra.mxu0 %v2874_v63  ;;  %2000 = vmatpush3.msra.mxu1 %v2877_v22 }
 0x5fe   :  { %1355 = vmatprep.subr.mxu0 %v2880_v23  ;;  %2001 = vmatprep.subr.mxu1 %v3049_v0 }
 0x5ff   :  { %1356 = vmatpush1.msra.mxu0 %v2884_v24  ;;  %2002 = vmatpush3.msra.mxu1 %v2887_v25 }
 0x600   :  { %1357 = vmatprep.subr.mxu0 %v2890_v26  ;;  %2003 = vmatprep.subr.mxu1 %v3049_v0  ;;  %v1487_v26 = vrot.slane %v189_v51, 2 }
 0x601   :  { %1358 = vmatpush1.msra.mxu0 %v2894_v27  ;;  %2004 = vmatpush3.msra.mxu1 %v2897_v28 }
 0x602   :  { %1359 = vmatprep.subr.mxu0 %v3077_v40  ;;  %2005 = vmatprep.subr.mxu1 %v3049_v0  ;;  %v1516_v40 = vrot.slane %v2788_v4, %v1497_v35 }
 0x603   :  { %1360 = vmatpush1.msra.mxu0 %v3078_v59  ;;  %2006 = vmatpush3.msra.mxu1 %v3079_v42  ;;  %v3086_v59 = vld [vmem:[#allocation18_spill] sm:$0xff] }
 0x604   :  { %1361 = vmatprep.subr.mxu0 %v3080_v53  ;;  %2007 = vmatprep.subr.mxu1 %v3049_v0  ;;  %v1537_v42 = vsel %vm1536_vm1, %v3086_v59, %v1498_v47  ;;  %v1522_v53 = vrot.slane %v2927_v29, %v1497_v35 }
 0x605   :  { %1362 = vmatpush1.msra.mxu0 %v3081_v52  ;;  %1395 = vmatprep.mubr.f32.mxu0 %v3049_v0 }
 0x606   :  { %2008 = vmatpush3.msra.mxu1 %v3082_v55  ;;  %2009 = vmatprep.mubr.msk.f32.mxu1 %vm2180_vm0, %v3049_v0  ;;  %v1324_v0 = vrot.slane %v178_v8, 2  ;;  %v1539_v55 = vsel %vm1538_vm2, %v1537_v42, %v1504_v21 }
 0x6a6   :  { %v1234_v9 = vpop.f32.mrf.mxu0  ;;  %v1305_v11 = vpop.f32.mrf.mxu1 }
 0x6a7   :  { %v1309_v10 = vadd.f32 %v1234_v9, %v178_v8  ;;  %v1322_v7 = vadd.f32 %v2115_v6, %v1305_v11  ;;  %v1541_v9 = vsel %vm1540_vm3, %v1539_v55, %v1510_v39 }
 0x6a8   :  { %v1976_v13 = vpop.f32.mrf.mxu1  ;;  %v1236_v14 = vpop.f32.mrf.mxu0 }
 0x6a9   :  { %v1310_v12 = vmul.f32 0.5, %v1309_v10  ;;  %v1317_v16 = vadd.f32 %v1315_v15, %v1236_v14  ;;  %v1543_v10 = vsel %vm1542_vm4, %v1541_v9, %v1516_v40 }
 0x6aa   :  { %v1545_v13 = vsel %vm1544_vm5, %v1543_v10, %v1522_v53 }
 0x6ab   :  { %2055 = vtanh.f32 %v1310_v12  ;;  %v1318_v17 = vmul.f32 0.5, %v1317_v16 }
 0x6ad   :  { %2057 = vtanh.f32 %v1318_v17 }
 0x6b8   :  { %v2056_v18 = vpop.eup %2055 }
 0x6b9   :  { %v1312_v20 = vmul.f32 0.5, %v2056_v18 }
 0x6ba   :  { %v2058_v48 = vpop.eup %2057 }
 0x6bb   :  { %v1313_v5 = vadd.f32 0.5, %v1312_v20  ;;  %v1320_v1 = vmul.f32 0.5, %v2058_v48 }
 0x6bd   :  { %v1323_v19 = vmul.f32 %v1322_v7, %v1313_v5  ;;  %v1321_v46 = vadd.f32 0.5, %v1320_v1 }
 0x6bf   :  { %v1326_v43 = vadd.f32 %v1324_v0, %v1323_v19 }
 0x6c1   :  { %2059 = vtanh.f32 %v1326_v43 }
 0x6ce   :  { %v2060_v45 = vpop.eup %2059 }
 0x6cf   :  { %v1328_v49 = vsub.f32 %v2927_v29, %v2060_v45 }
 0x6d1   :  { %v1329_v50 = vmul.f32 %v1328_v49, %v1321_v46 }
 0x6d3   :  { %v1330_v58 = vadd.f32 %v2060_v45, %v1329_v50 }
 0x6d5   :  { %1396 = vmatmul.mubr.f32.vlgmr.msra.gmra.mxu0 %v1330_v58  ;;  %2010 = vmatmul.mubr.f32.vlgmr.msra.gmra.mxu1 %v1330_v58  ;;  %v1528_v8 = vrot.slane %v1330_v58, %v1497_v35 }
 0x6d7   :  { %v1547_v15 = vsel %vm1546_vm6, %v1545_v13, %v1528_v8 }
 0x795   :  { %v1397_v56 = vpop.f32.mrf.mxu0  ;;  %v1468_v57 = vpop.f32.mrf.mxu1 }
 0x796   :  { %v1472_v54 = vadd.f32 %v1397_v56, %v189_v51  ;;  %v1485_v28 = vadd.f32 %v2115_v6, %v1468_v57 }
 0x797   :  { %v2011_v61 = vpop.f32.mrf.mxu1  ;;  %v1399_v63 = vpop.f32.mrf.mxu0 }
 0x798   :  { %v1473_v60 = vmul.f32 0.5, %v1472_v54  ;;  %v1480_v22 = vadd.f32 %v1478_v62, %v1399_v63 }
 0x79a   :  { %2061 = vtanh.f32 %v1473_v60  ;;  %v1481_v23 = vmul.f32 0.5, %v1480_v22 }
 0x79c   :  { %2063 = vtanh.f32 %v1481_v23 }
 0x7a7   :  { %v2062_v24 = vpop.eup %2061 }
 0x7a8   :  { %v1475_v25 = vmul.f32 0.5, %v2062_v24 }
 0x7a9   :  { %v2064_v34 = vpop.eup %2063 }
 0x7aa   :  { %v1476_v27 = vadd.f32 0.5, %v1475_v25  ;;  %v1483_v37 = vmul.f32 0.5, %v2064_v34 }
 0x7ac   :  { %v1486_v30 = vmul.f32 %v1485_v28, %v1476_v27  ;;  %v1484_v38 = vadd.f32 0.5, %v1483_v37 }
 0x7ae   :  { %v1489_v31 = vadd.f32 %v1487_v26, %v1486_v30 }
 0x7b0   :  { %2065 = vtanh.f32 %v1489_v31 }
 0x7bd   :  { %v2066_v2 = vpop.eup %2065 }
 0x7be   :  { %v1491_v41 = vsub.f32 %v1330_v58, %v2066_v2 }
 0x7c0   :  { %v1492_v52 = vmul.f32 %v1491_v41, %v1484_v38 }
 0x7c2   :  { %v1493_v11 = vadd.f32 %v2066_v2, %v1492_v52 }
 0x7c4   :  { %v1534_v12 = vrot.slane %v1493_v11, %v1497_v35 }
 0x7c6   :  { %v1549_v14 = vsel %vm1548_vm7, %v1547_v15, %v1534_v12 }
 0x7c7   :  { %1550 = vst [vmem:[%s3014_s5] sm:$0xff] %v1549_v14 }
 0x7c8   :  { %1555 = vsyncpa [#allocation5], 1 }
 0x7c9   :  { %1556 = vsyncpa [#allocation7], 1 }

</bundles_post_ra>
